<compile_context>
chip_gen: v7x
topology: tpu7x:2x2x1
jax: 0.10.0
libtpu: 0.0.40
codegen_flags: <defaults>
</compile_context>

<pallas_src>
import functools
import jax
import jax.numpy as jnp
from jax.experimental import pallas as pl
from jax.experimental.pallas import tpu as pltpu

# ---------------- model configuration (small, TPU-tile friendly) ------------
BATCH = 2
SEQ = 16
HIDDEN = 128          # stands in for 768
N_HEADS = 2
HEAD_DIM = HIDDEN // N_HEADS
INTERMEDIATE = 256    # stands in for 3072
N_LAYERS = 2          # stands in for 12
VOCAB = 64
TYPE_VOCAB = 2
MAX_POS = 32
CLASS_NUM = 4
CLS_PAD = 128         # lane-dense padded classifier width
LN_EPS = 1e-12


# ------------------------------ kernel helpers -------------------------------
def _layernorm(h, g, b):
    """LayerNorm over last axis, f32 math. g,b are (1, H)."""
    mu = jnp.mean(h, axis=-1, keepdims=True)
    var = jnp.mean((h - mu) ** 2, axis=-1, keepdims=True)
    return (h - mu) * jax.lax.rsqrt(var + LN_EPS) * g + b


def _gelu(x):
    """tanh-approx GELU (BERT intermediate activation), f32 math."""
    return 0.5 * x * (1.0 + jnp.tanh(
        0.7978845608028654 * (x + 0.044715 * x * x * x)))


def _bf16_dot(a, b_ref_val, bias=None):
    """bf16 MXU matmul with f32 accumulation (+ optional f32 bias)."""
    acc = jnp.dot(a.astype(jnp.bfloat16), b_ref_val,
                  preferred_element_type=jnp.float32)
    if bias is not None:
        acc = acc + bias
    return acc


# ------------------------- fused encoder kernel ------------------------------
def _encoder_kernel(emb_ref, mask_ref, emb_g_ref, emb_b_ref,
                    wqkv_ref, bqkv_ref, wo_ref, bo_ref, ln1g_ref, ln1b_ref,
                    wi_ref, bi_ref, wp_ref, bp_ref, ln2g_ref, ln2b_ref,
                    hid_ref, *, batch, seq, n_heads):
    """One transformer layer per grid step; hidden state resident in hid_ref."""
    H = emb_ref.shape[-1]
    Dh = H // n_heads
    scale = 1.0 / (Dh ** 0.5)

    # Layer 0: embedding LayerNorm initializes the resident hidden state.
    @pl.when(pl.program_id(0) == 0)
    def _():
        hid_ref[...] = _layernorm(emb_ref[...], emb_g_ref[...], emb_b_ref[...])

    x = hid_ref[...]                                           # (M, H) f32

    # ---- packed QKV projection: one (M,H) x (H,3H) matmul -------------------
    qkv = _bf16_dot(x, wqkv_ref[...], bqkv_ref[...])           # (M, 3H) f32
    q = qkv[:, :H]
    k = qkv[:, H:2 * H]
    v = qkv[:, 2 * H:]

    # ---- attention, per (batch, head), fully unrolled ------------------------
    mask = mask_ref[...]                                       # (B, S) additive
    batch_rows = []
    for b in range(batch):
        mrow = mask[b:b + 1, :]                                # (1, S)
        head_blocks = []
        for h in range(n_heads):
            r0, r1 = b * seq, (b + 1) * seq
            c0, c1 = h * Dh, (h + 1) * Dh
            qs = q[r0:r1, c0:c1]                               # (S, Dh)
            ks = k[r0:r1, c0:c1]
            vs = v[r0:r1, c0:c1]
            s = jax.lax.dot_general(
                qs.astype(jnp.bfloat16), ks.astype(jnp.bfloat16),
                (((1,), (1,)), ((), ())),
                preferred_element_type=jnp.float32) * scale    # (S, S)
            s = s + mrow
            s = s - jnp.max(s, axis=-1, keepdims=True)
            p = jnp.exp(s)
            p = p * pl.reciprocal(jnp.sum(p, axis=-1, keepdims=True),
                                  approx=True)
            head_blocks.append(
                jnp.dot(p.astype(jnp.bfloat16), vs.astype(jnp.bfloat16),
                        preferred_element_type=jnp.float32))   # (S, Dh)
        batch_rows.append(jnp.concatenate(head_blocks, axis=-1))   # (S, H)
    ctx = jnp.concatenate(batch_rows, axis=0)                      # (M, H)

    # ---- attention output projection + residual LayerNorm --------------------
    attn_out = _bf16_dot(ctx, wo_ref[...], bo_ref[...])
    h1 = _layernorm(attn_out + x, ln1g_ref[...], ln1b_ref[...])

    # ---- feed-forward (GELU) + residual LayerNorm -----------------------------
    inter = _gelu(_bf16_dot(h1, wi_ref[...], bi_ref[...]))     # (M, I) f32
    ffn = _bf16_dot(inter, wp_ref[...], bp_ref[...])           # (M, H) f32
    hid_ref[...] = _layernorm(ffn + h1, ln2g_ref[...], ln2b_ref[...])


def run_encoder(emb2d, add_mask, p):
    """Whole encoder in one pallas_call; returns last_hidden_state (B*S, H)."""
    M, H = emb2d.shape
    B = M // SEQ
    H3 = 3 * H
    I = INTERMEDIATE
    L = N_LAYERS

    def layer_spec(d0, d1):
        return pl.BlockSpec((pl.Squeezed(), d0, d1), lambda l: (l, 0, 0))

    def const_spec(d0, d1):
        return pl.BlockSpec((d0, d1), lambda l: (0, 0))

    kernel = functools.partial(_encoder_kernel, batch=B, seq=SEQ,
                               n_heads=N_HEADS)
    return pl.pallas_call(
        kernel,
        out_shape=jax.ShapeDtypeStruct((M, H), jnp.float32),
        grid=(L,),
        in_specs=[
            const_spec(M, H),        # summed embeddings
            const_spec(B, SEQ),      # additive attention mask
            const_spec(1, H),        # embedding LN gamma
            const_spec(1, H),        # embedding LN beta
            layer_spec(H, H3),       # packed Wqkv (bf16)
            layer_spec(1, H3),       # packed bqkv
            layer_spec(H, H),        # Wo (bf16)
            layer_spec(1, H),        # bo
            layer_spec(1, H),        # ln1 gamma
            layer_spec(1, H),        # ln1 beta
            layer_spec(H, I),        # Wi (bf16)
            layer_spec(1, I),        # bi
            layer_spec(I, H),        # Wp (bf16)
            layer_spec(1, H),        # bp
            layer_spec(1, H),        # ln2 gamma
            layer_spec(1, H),        # ln2 beta
        ],
        out_specs=const_spec(M, H),
        compiler_params=pltpu.CompilerParams(
            dimension_semantics=("arbitrary",)),
    )(emb2d, add_mask,
      p["emb_ln_g"], p["emb_ln_b"],
      p["wqkv"], p["bqkv"], p["wo"], p["bo"], p["ln1_g"], p["ln1_b"],
      p["wi"], p["bi"], p["wp"], p["bp"], p["ln2_g"], p["ln2_b"])


# ------------------- fused pooler + classification head ----------------------
def _head_kernel(cls_ref, pw_ref, pb_ref, prew_ref, preb_ref,
                 cw_ref, cb_ref, o_ref):
    """tanh pooler -> pre_classifier -> ReLU -> (dropout=identity) -> classifier."""
    x = cls_ref[...]                                           # (B, H) f32
    pooled = jnp.tanh(_bf16_dot(x, pw_ref[...], pb_ref[...]))
    h = jnp.maximum(_bf16_dot(pooled, prew_ref[...], preb_ref[...]), 0.0)
    logits = _bf16_dot(h, cw_ref[...], cb_ref[...])            # (B, CLS_PAD)
    o_ref[...] = logits.astype(o_ref.dtype)


def run_head(cls_tok, p):
    B, H = cls_tok.shape

    def spec(d0, d1):
        return pl.BlockSpec((d0, d1), lambda i: (0, 0))

    return pl.pallas_call(
        _head_kernel,
        out_shape=jax.ShapeDtypeStruct((B, CLS_PAD), jnp.float32),
        grid=(1,),
        in_specs=[spec(B, H),
                  spec(H, H), spec(1, H),
                  spec(H, H), spec(1, H),
                  spec(H, CLS_PAD), spec(1, CLS_PAD)],
        out_specs=spec(B, CLS_PAD),
    )(cls_tok, p["pool_w"], p["pool_b"], p["pre_w"], p["pre_b"],
      p["cls_w"], p["cls_b"])


# ------------------------------ parameter init -------------------------------
def init_params(key):
    def nrm(key, shape, scale=0.02, dtype=jnp.float32):
        return (scale * jax.random.normal(key, shape)).astype(dtype)

    keys = iter(jax.random.split(key, 64))
    L, H, I, H3 = N_LAYERS, HIDDEN, INTERMEDIATE, 3 * HIDDEN

    cls_w = nrm(next(keys), (H, CLASS_NUM))
    cls_w_pad = jnp.zeros((H, CLS_PAD), jnp.float32).at[:, :CLASS_NUM].set(cls_w)

    p = {
        "word_emb": nrm(next(keys), (VOCAB, H)),
        "pos_emb": nrm(next(keys), (MAX_POS, H)),
        "type_emb": nrm(next(keys), (TYPE_VOCAB, H)),
        "emb_ln_g": jnp.ones((1, H), jnp.float32),
        "emb_ln_b": jnp.zeros((1, H), jnp.float32),
        # layer-stacked weights: matmul weights in bf16, biases / LN in f32
        "wqkv": nrm(next(keys), (L, H, H3), dtype=jnp.bfloat16),
        "bqkv": jnp.zeros((L, 1, H3), jnp.float32),
        "wo": nrm(next(keys), (L, H, H), dtype=jnp.bfloat16),
        "bo": jnp.zeros((L, 1, H), jnp.float32),
        "ln1_g": jnp.ones((L, 1, H), jnp.float32),
        "ln1_b": jnp.zeros((L, 1, H), jnp.float32),
        "wi": nrm(next(keys), (L, H, I), dtype=jnp.bfloat16),
        "bi": jnp.zeros((L, 1, I), jnp.float32),
        "wp": nrm(next(keys), (L, I, H), dtype=jnp.bfloat16),
        "bp": jnp.zeros((L, 1, H), jnp.float32),
        "ln2_g": jnp.ones((L, 1, H), jnp.float32),
        "ln2_b": jnp.zeros((L, 1, H), jnp.float32),
        # pooler + classification head
        "pool_w": nrm(next(keys), (H, H), dtype=jnp.bfloat16),
        "pool_b": jnp.zeros((1, H), jnp.float32),
        "pre_w": nrm(next(keys), (H, H), dtype=jnp.bfloat16),
        "pre_b": jnp.zeros((1, H), jnp.float32),
        "cls_w": cls_w_pad.astype(jnp.bfloat16),
        "cls_b": jnp.zeros((1, CLS_PAD), jnp.float32),
    }
    return p


# ------------------------------ forward pass ---------------------------------
@jax.jit
def bert_classification_forward(params, input_ids, attention_mask,
                                token_type_ids):
    B, S = input_ids.shape
    H = HIDDEN

    # embeddings (gathers are XLA glue; LN runs inside the fused encoder kernel)
    we = params["word_emb"][input_ids]                       # (B,S,H)
    pe = params["pos_emb"][jnp.arange(S)][None, :, :]        # (1,S,H)
    te = params["type_emb"][token_type_ids]                  # (B,S,H)
    emb = (we + pe + te).reshape(B * S, H)

    # extended additive attention mask: (B, S)
    add_mask = (1.0 - attention_mask.astype(jnp.float32)) * -10000.0

    # whole encoder (all layers) in a single fused pallas_call
    last_hidden = run_encoder(emb, add_mask, params)         # (B*S, H)

    # BERT pooler input: CLS token rows
    cls_tok = last_hidden.reshape(B, S, H)[:, 0, :]          # (B, H)

    # fused pooler + pre_classifier + ReLU + dropout(identity) + classifier
    logits_pad = run_head(cls_tok, params)                   # (B, CLS_PAD)
    return logits_pad[:, :CLASS_NUM]


# ---------------------------------- main --------------------------------------
if __name__ == "__main__":
    key = jax.random.PRNGKey(0)
    k_param, k_ids = jax.random.split(key)

    params = init_params(k_param)
    input_ids = jax.random.randint(k_ids, (BATCH, SEQ), 0, VOCAB, dtype=jnp.int32)
    attention_mask = jnp.ones((BATCH, SEQ), jnp.int32)
    token_type_ids = jnp.zeros((BATCH, SEQ), jnp.int32)

    logits = bert_classification_forward(params, input_ids, attention_mask,
                                         token_type_ids)
    jax.block_until_ready(logits)
    assert logits.shape == (BATCH, CLASS_NUM) and logits.dtype == jnp.float32
    assert bool(jnp.all(jnp.isfinite(logits)))
    print("KERNEL_OK")
</pallas_src>

<mosaic_0001>
module attributes {stable_mosaic.version = 11 : i64} {
  func.func @_head_kernel(%arg0: i32, %arg1: memref<2x128xf32, #tpu.memory_space<vmem>>, %arg2: memref<128x128xbf16, #tpu.memory_space<vmem>>, %arg3: memref<1x128xf32, #tpu.memory_space<vmem>>, %arg4: memref<128x128xbf16, #tpu.memory_space<vmem>>, %arg5: memref<1x128xf32, #tpu.memory_space<vmem>>, %arg6: memref<128x128xbf16, #tpu.memory_space<vmem>>, %arg7: memref<1x128xf32, #tpu.memory_space<vmem>>, %arg8: memref<2x128xf32, #tpu.memory_space<vmem>>) attributes {dimension_semantics = [#tpu.dimension_semantics<arbitrary>], iteration_bounds = array<i64: 1>, scalar_prefetch = 0 : i64, scratch_operands = 0 : i64, tpu.core_type = #tpu.core_type<tc>, window_params = [{pipeline_mode = #tpu.pipeline_mode<synchronous>, transform_indices = @transform_0, window_bounds = array<i64: 2, 128>}, {pipeline_mode = #tpu.pipeline_mode<synchronous>, transform_indices = @transform_1, window_bounds = array<i64: 128, 128>}, {pipeline_mode = #tpu.pipeline_mode<synchronous>, transform_indices = @transform_2, window_bounds = array<i64: 1, 128>}, {pipeline_mode = #tpu.pipeline_mode<synchronous>, transform_indices = @transform_3, window_bounds = array<i64: 128, 128>}, {pipeline_mode = #tpu.pipeline_mode<synchronous>, transform_indices = @transform_4, window_bounds = array<i64: 1, 128>}, {pipeline_mode = #tpu.pipeline_mode<synchronous>, transform_indices = @transform_5, window_bounds = array<i64: 128, 128>}, {pipeline_mode = #tpu.pipeline_mode<synchronous>, transform_indices = @transform_6, window_bounds = array<i64: 1, 128>}, {pipeline_mode = #tpu.pipeline_mode<synchronous>, transform_indices = @transform_7, window_bounds = array<i64: 2, 128>}]} {
    %c0 = arith.constant 0 : index
    %c0_0 = arith.constant 0 : index
    %0 = vector.load %arg1[%c0, %c0_0] : memref<2x128xf32, #tpu.memory_space<vmem>>, vector<2x128xf32>
    %c0_1 = arith.constant 0 : index
    %c0_2 = arith.constant 0 : index
    %1 = vector.load %arg2[%c0_1, %c0_2] : memref<128x128xbf16, #tpu.memory_space<vmem>>, vector<128x128xbf16>
    %c0_3 = arith.constant 0 : index
    %c0_4 = arith.constant 0 : index
    %2 = vector.load %arg3[%c0_3, %c0_4] : memref<1x128xf32, #tpu.memory_space<vmem>>, vector<1x128xf32>
    %3 = arith.truncf %0 : vector<2x128xf32> to vector<2x128xbf16>
    %cst = arith.constant dense<0.000000e+00> : vector<2x128xf32>
    %4 = tpu.matmul %3, %1, %cst {dimension_numbers = #tpu.dot_dimension_numbers<[1], [0], [0], [1], [0, 0, 1, 1], [], []>} : vector<2x128xbf16>, vector<128x128xbf16>, vector<2x128xf32> -> vector<2x128xf32>
    %5 = vector.broadcast %2 : vector<1x128xf32> to vector<2x128xf32>
    %6 = arith.addf %4, %5 : vector<2x128xf32>
    %7 = math.tanh %6 : vector<2x128xf32>
    %c0_5 = arith.constant 0 : index
    %c0_6 = arith.constant 0 : index
    %8 = vector.load %arg4[%c0_5, %c0_6] : memref<128x128xbf16, #tpu.memory_space<vmem>>, vector<128x128xbf16>
    %c0_7 = arith.constant 0 : index
    %c0_8 = arith.constant 0 : index
    %9 = vector.load %arg5[%c0_7, %c0_8] : memref<1x128xf32, #tpu.memory_space<vmem>>, vector<1x128xf32>
    %10 = arith.truncf %7 : vector<2x128xf32> to vector<2x128xbf16>
    %cst_9 = arith.constant dense<0.000000e+00> : vector<2x128xf32>
    %11 = tpu.matmul %10, %8, %cst_9 {dimension_numbers = #tpu.dot_dimension_numbers<[1], [0], [0], [1], [0, 0, 1, 1], [], []>} : vector<2x128xbf16>, vector<128x128xbf16>, vector<2x128xf32> -> vector<2x128xf32>
    %12 = vector.broadcast %9 : vector<1x128xf32> to vector<2x128xf32>
    %13 = arith.addf %11, %12 : vector<2x128xf32>
    %cst_10 = arith.constant 0.000000e+00 : f32
    %14 = vector.broadcast %cst_10 : f32 to vector<2x128xf32>
    %15 = arith.maximumf %13, %14 : vector<2x128xf32>
    %c0_11 = arith.constant 0 : index
    %c0_12 = arith.constant 0 : index
    %16 = vector.load %arg6[%c0_11, %c0_12] : memref<128x128xbf16, #tpu.memory_space<vmem>>, vector<128x128xbf16>
    %c0_13 = arith.constant 0 : index
    %c0_14 = arith.constant 0 : index
    %17 = vector.load %arg7[%c0_13, %c0_14] : memref<1x128xf32, #tpu.memory_space<vmem>>, vector<1x128xf32>
    %18 = arith.truncf %15 : vector<2x128xf32> to vector<2x128xbf16>
    %cst_15 = arith.constant dense<0.000000e+00> : vector<2x128xf32>
    %19 = tpu.matmul %18, %16, %cst_15 {dimension_numbers = #tpu.dot_dimension_numbers<[1], [0], [0], [1], [0, 0, 1, 1], [], []>} : vector<2x128xbf16>, vector<128x128xbf16>, vector<2x128xf32> -> vector<2x128xf32>
    %20 = vector.broadcast %17 : vector<1x128xf32> to vector<2x128xf32>
    %21 = arith.addf %19, %20 : vector<2x128xf32>
    %c0_16 = arith.constant 0 : index
    %c0_17 = arith.constant 0 : index
    %22 = vector.load %arg8[%c0_16, %c0_17] : memref<2x128xf32, #tpu.memory_space<vmem>>, vector<2x128xf32>
    tpu.vector_store %arg8[%c0_16, %c0_17], %21 {strides = array<i32>} : memref<2x128xf32, #tpu.memory_space<vmem>>, vector<2x128xf32>,
    return
  }
  func.func @transform_0(%arg0: i32) -> (i32, i32) {
    %c0_i32 = arith.constant 0 : i32
    %c0_i32_0 = arith.constant 0 : i32
    %c0_i32_1 = arith.constant 0 : i32
    return %c0_i32, %c0_i32_0 : i32, i32
  }
  func.func @transform_1(%arg0: i32) -> (i32, i32) {
    %c0_i32 = arith.constant 0 : i32
    %c0_i32_0 = arith.constant 0 : i32
    %c0_i32_1 = arith.constant 0 : i32
    return %c0_i32, %c0_i32_0 : i32, i32
  }
  func.func @transform_2(%arg0: i32) -> (i32, i32) {
    %c0_i32 = arith.constant 0 : i32
    %c0_i32_0 = arith.constant 0 : i32
    %c0_i32_1 = arith.constant 0 : i32
    return %c0_i32, %c0_i32_0 : i32, i32
  }
  func.func @transform_3(%arg0: i32) -> (i32, i32) {
    %c0_i32 = arith.constant 0 : i32
    %c0_i32_0 = arith.constant 0 : i32
    %c0_i32_1 = arith.constant 0 : i32
    return %c0_i32, %c0_i32_0 : i32, i32
  }
  func.func @transform_4(%arg0: i32) -> (i32, i32) {
    %c0_i32 = arith.constant 0 : i32
    %c0_i32_0 = arith.constant 0 : i32
    %c0_i32_1 = arith.constant 0 : i32
    return %c0_i32, %c0_i32_0 : i32, i32
  }
  func.func @transform_5(%arg0: i32) -> (i32, i32) {
    %c0_i32 = arith.constant 0 : i32
    %c0_i32_0 = arith.constant 0 : i32
    %c0_i32_1 = arith.constant 0 : i32
    return %c0_i32, %c0_i32_0 : i32, i32
  }
  func.func @transform_6(%arg0: i32) -> (i32, i32) {
    %c0_i32 = arith.constant 0 : i32
    %c0_i32_0 = arith.constant 0 : i32
    %c0_i32_1 = arith.constant 0 : i32
    return %c0_i32, %c0_i32_0 : i32, i32
  }
  func.func @transform_7(%arg0: i32) -> (i32, i32) {
    %c0_i32 = arith.constant 0 : i32
    %c0_i32_0 = arith.constant 0 : i32
    %c0_i32_1 = arith.constant 0 : i32
    return %c0_i32, %c0_i32_0 : i32, i32
  }
}

module attributes {stable_mosaic.version = 11 : i64} {
  func.func @_encoder_kernel(%arg0: i32, %arg1: memref<32x128xf32, #tpu.memory_space<vmem>>, %arg2: memref<2x16xf32, #tpu.memory_space<vmem>>, %arg3: memref<1x128xf32, #tpu.memory_space<vmem>>, %arg4: memref<1x128xf32, #tpu.memory_space<vmem>>, %arg5: memref<1x128x384xbf16, #tpu.memory_space<vmem>>, %arg6: memref<1x1x384xf32, #tpu.memory_space<vmem>>, %arg7: memref<1x128x128xbf16, #tpu.memory_space<vmem>>, %arg8: memref<1x1x128xf32, #tpu.memory_space<vmem>>, %arg9: memref<1x1x128xf32, #tpu.memory_space<vmem>>, %arg10: memref<1x1x128xf32, #tpu.memory_space<vmem>>, %arg11: memref<1x128x256xbf16, #tpu.memory_space<vmem>>, %arg12: memref<1x1x256xf32, #tpu.memory_space<vmem>>, %arg13: memref<1x256x128xbf16, #tpu.memory_space<vmem>>, %arg14: memref<1x1x128xf32, #tpu.memory_space<vmem>>, %arg15: memref<1x1x128xf32, #tpu.memory_space<vmem>>, %arg16: memref<1x1x128xf32, #tpu.memory_space<vmem>>, %arg17: memref<32x128xf32, #tpu.memory_space<vmem>>) attributes {dimension_semantics = [#tpu.dimension_semantics<arbitrary>], iteration_bounds = array<i64: 2>, scalar_prefetch = 0 : i64, scratch_operands = 0 : i64, tpu.core_type = #tpu.core_type<tc>, window_params = [{pipeline_mode = #tpu.pipeline_mode<synchronous>, transform_indices = @transform_0, window_bounds = array<i64: 32, 128>}, {pipeline_mode = #tpu.pipeline_mode<synchronous>, transform_indices = @transform_1, window_bounds = array<i64: 2, 16>}, {pipeline_mode = #tpu.pipeline_mode<synchronous>, transform_indices = @transform_2, window_bounds = array<i64: 1, 128>}, {pipeline_mode = #tpu.pipeline_mode<synchronous>, transform_indices = @transform_3, window_bounds = array<i64: 1, 128>}, {transform_indices = @transform_4, window_bounds = array<i64: 1, 128, 384>}, {transform_indices = @transform_5, window_bounds = array<i64: 1, 1, 384>}, {transform_indices = @transform_6, window_bounds = array<i64: 1, 128, 128>}, {transform_indices = @transform_7, window_bounds = array<i64: 1, 1, 128>}, {transform_indices = @transform_8, window_bounds = array<i64: 1, 1, 128>}, {transform_indices = @transform_9, window_bounds = array<i64: 1, 1, 128>}, {transform_indices = @transform_10, window_bounds = array<i64: 1, 128, 256>}, {transform_indices = @transform_11, window_bounds = array<i64: 1, 1, 256>}, {transform_indices = @transform_12, window_bounds = array<i64: 1, 256, 128>}, {transform_indices = @transform_13, window_bounds = array<i64: 1, 1, 128>}, {transform_indices = @transform_14, window_bounds = array<i64: 1, 1, 128>}, {transform_indices = @transform_15, window_bounds = array<i64: 1, 1, 128>}, {pipeline_mode = #tpu.pipeline_mode<synchronous>, transform_indices = @transform_16, window_bounds = array<i64: 32, 128>}]} {
    %c0_i32 = arith.constant 0 : i32
    %0 = arith.cmpi eq, %arg0, %c0_i32 : i32
    %1 = arith.extui %0 : i1 to i32
    %c0_i32_0 = arith.constant 0 : i32
    %2 = arith.cmpi ne, %1, %c0_i32_0 : i32
    scf.if %2 {
      %c0_79 = arith.constant 0 : index
      %c0_80 = arith.constant 0 : index
      %205 = vector.load %arg1[%c0_79, %c0_80] : memref<32x128xf32, #tpu.memory_space<vmem>>, vector<32x128xf32>
      %c0_81 = arith.constant 0 : index
      %c0_82 = arith.constant 0 : index
      %206 = vector.load %arg3[%c0_81, %c0_82] : memref<1x128xf32, #tpu.memory_space<vmem>>, vector<1x128xf32>
      %c0_83 = arith.constant 0 : index
      %c0_84 = arith.constant 0 : index
      %207 = vector.load %arg4[%c0_83, %c0_84] : memref<1x128xf32, #tpu.memory_space<vmem>>, vector<1x128xf32>
      %cst_85 = arith.constant dense<0.000000e+00> : vector<32xf32>
      %208 = vector.multi_reduction <add>, %205, %cst_85 [1] : vector<32x128xf32> to vector<32xf32>
      %209 = vector.shape_cast %208 : vector<32xf32> to vector<32x1xf32>
      %cst_86 = arith.constant 1.280000e+02 : f32
      %210 = vector.broadcast %cst_86 : f32 to vector<32x1xf32>
      %211 = arith.divf %209, %210 : vector<32x1xf32>
      %212 = vector.broadcast %211 : vector<32x1xf32> to vector<32x128xf32>
      %213 = arith.subf %205, %212 : vector<32x128xf32>
      %214 = arith.mulf %213, %213 : vector<32x128xf32>
      %cst_87 = arith.constant dense<0.000000e+00> : vector<32xf32>
      %215 = vector.multi_reduction <add>, %214, %cst_87 [1] : vector<32x128xf32> to vector<32xf32>
      %216 = vector.shape_cast %215 : vector<32xf32> to vector<32x1xf32>
      %cst_88 = arith.constant 1.280000e+02 : f32
      %217 = vector.broadcast %cst_88 : f32 to vector<32x1xf32>
      %218 = arith.divf %216, %217 : vector<32x1xf32>
      %219 = vector.broadcast %211 : vector<32x1xf32> to vector<32x128xf32>
      %220 = arith.subf %205, %219 : vector<32x128xf32>
      %cst_89 = arith.constant 9.99999996E-13 : f32
      %221 = vector.broadcast %cst_89 : f32 to vector<32x1xf32>
      %222 = arith.addf %218, %221 : vector<32x1xf32>
      %223 = math.rsqrt %222 : vector<32x1xf32>
      %224 = vector.broadcast %223 : vector<32x1xf32> to vector<32x128xf32>
      %225 = arith.mulf %220, %224 : vector<32x128xf32>
      %226 = vector.broadcast %206 : vector<1x128xf32> to vector<32x128xf32>
      %227 = arith.mulf %225, %226 : vector<32x128xf32>
      %228 = vector.broadcast %207 : vector<1x128xf32> to vector<32x128xf32>
      %229 = arith.addf %227, %228 : vector<32x128xf32>
      %c0_90 = arith.constant 0 : index
      %c0_91 = arith.constant 0 : index
      %230 = vector.load %arg17[%c0_90, %c0_91] : memref<32x128xf32, #tpu.memory_space<vmem>>, vector<32x128xf32>
      tpu.vector_store %arg17[%c0_90, %c0_91], %229 {strides = array<i32>} : memref<32x128xf32, #tpu.memory_space<vmem>>, vector<32x128xf32>,
    } else {
    }
    %c0 = arith.constant 0 : index
    %c0_1 = arith.constant 0 : index
    %3 = vector.load %arg17[%c0, %c0_1] : memref<32x128xf32, #tpu.memory_space<vmem>>, vector<32x128xf32>
    %c0_2 = arith.constant 0 : index
    %c0_3 = arith.constant 0 : index
    %c0_4 = arith.constant 0 : index
    %4 = vector.load %arg5[%c0_2, %c0_3, %c0_4] : memref<1x128x384xbf16, #tpu.memory_space<vmem>>, vector<1x128x384xbf16>
    %5 = vector.shape_cast %4 : vector<1x128x384xbf16> to vector<128x384xbf16>
    %c0_5 = arith.constant 0 : index
    %c0_6 = arith.constant 0 : index
    %c0_7 = arith.constant 0 : index
    %6 = vector.load %arg6[%c0_5, %c0_6, %c0_7] : memref<1x1x384xf32, #tpu.memory_space<vmem>>, vector<1x1x384xf32>
    %7 = vector.shape_cast %6 : vector<1x1x384xf32> to vector<1x384xf32>
    %8 = arith.truncf %3 : vector<32x128xf32> to vector<32x128xbf16>
    %cst = arith.constant dense<0.000000e+00> : vector<32x384xf32>
    %9 = tpu.matmul %8, %5, %cst {dimension_numbers = #tpu.dot_dimension_numbers<[1], [0], [0], [1], [0, 0, 1, 1], [], []>} : vector<32x128xbf16>, vector<128x384xbf16>, vector<32x384xf32> -> vector<32x384xf32>
    %10 = vector.broadcast %7 : vector<1x384xf32> to vector<32x384xf32>
    %11 = arith.addf %9, %10 : vector<32x384xf32>
    %12 = vector.extract_strided_slice %11 {offsets = [0, 0], sizes = [32, 128], strides = [1, 1]} : vector<32x384xf32> to vector<32x128xf32>
    %13 = vector.extract_strided_slice %11 {offsets = [0, 128], sizes = [32, 128], strides = [1, 1]} : vector<32x384xf32> to vector<32x128xf32>
    %14 = vector.extract_strided_slice %11 {offsets = [0, 256], sizes = [32, 128], strides = [1, 1]} : vector<32x384xf32> to vector<32x128xf32>
    %c0_8 = arith.constant 0 : index
    %c0_9 = arith.constant 0 : index
    %15 = vector.load %arg2[%c0_8, %c0_9] : memref<2x16xf32, #tpu.memory_space<vmem>>, vector<2x16xf32>
    %16 = vector.extract_strided_slice %15 {offsets = [0, 0], sizes = [1, 16], strides = [1, 1]} : vector<2x16xf32> to vector<1x16xf32>
    %17 = vector.extract_strided_slice %12 {offsets = [0, 0], sizes = [16, 64], strides = [1, 1]} : vector<32x128xf32> to vector<16x64xf32>
    %18 = vector.extract_strided_slice %13 {offsets = [0, 0], sizes = [16, 64], strides = [1, 1]} : vector<32x128xf32> to vector<16x64xf32>
    %19 = vector.extract_strided_slice %14 {offsets = [0, 0], sizes = [16, 64], strides = [1, 1]} : vector<32x128xf32> to vector<16x64xf32>
    %20 = arith.truncf %17 : vector<16x64xf32> to vector<16x64xbf16>
    %21 = arith.truncf %18 : vector<16x64xf32> to vector<16x64xbf16>
    %cst_10 = arith.constant dense<0.000000e+00> : vector<16x16xf32>
    %22 = tpu.matmul %20, %21, %cst_10 {dimension_numbers = #tpu.dot_dimension_numbers<[1], [1], [0], [0], [0, 0, 1, 0], [], []>} : vector<16x64xbf16>, vector<16x64xbf16>, vector<16x16xf32> -> vector<16x16xf32>
    %cst_11 = arith.constant 1.250000e-01 : f32
    %23 = vector.broadcast %cst_11 : f32 to vector<16x16xf32>
    %24 = arith.mulf %22, %23 : vector<16x16xf32>
    %25 = vector.broadcast %16 : vector<1x16xf32> to vector<16x16xf32>
    %26 = arith.addf %24, %25 : vector<16x16xf32>
    %cst_12 = arith.constant dense<0xFF800000> : vector<16xf32>
    %27 = vector.multi_reduction <maximumf>, %26, %cst_12 [1] : vector<16x16xf32> to vector<16xf32>
    %28 = vector.shape_cast %27 : vector<16xf32> to vector<16x1xf32>
    %29 = vector.broadcast %28 : vector<16x1xf32> to vector<16x16xf32>
    %30 = arith.subf %26, %29 : vector<16x16xf32>
    %31 = math.exp %30 : vector<16x16xf32>
    %cst_13 = arith.constant dense<0.000000e+00> : vector<16xf32>
    %32 = vector.multi_reduction <add>, %31, %cst_13 [1] : vector<16x16xf32> to vector<16xf32>
    %33 = vector.shape_cast %32 : vector<16xf32> to vector<16x1xf32>
    %34 = tpu.reciprocal %33 {approx = true} : vector<16x1xf32> -> vector<16x1xf32>
    %35 = vector.broadcast %34 : vector<16x1xf32> to vector<16x16xf32>
    %36 = arith.mulf %31, %35 : vector<16x16xf32>
    %37 = arith.truncf %36 : vector<16x16xf32> to vector<16x16xbf16>
    %38 = arith.truncf %19 : vector<16x64xf32> to vector<16x64xbf16>
    %cst_14 = arith.constant dense<0.000000e+00> : vector<16x64xf32>
    %39 = tpu.matmul %37, %38, %cst_14 {dimension_numbers = #tpu.dot_dimension_numbers<[1], [0], [0], [1], [0, 0, 1, 1], [], []>} : vector<16x16xbf16>, vector<16x64xbf16>, vector<16x64xf32> -> vector<16x64xf32>
    %40 = vector.extract_strided_slice %12 {offsets = [0, 64], sizes = [16, 64], strides = [1, 1]} : vector<32x128xf32> to vector<16x64xf32>
    %41 = vector.extract_strided_slice %13 {offsets = [0, 64], sizes = [16, 64], strides = [1, 1]} : vector<32x128xf32> to vector<16x64xf32>
    %42 = vector.extract_strided_slice %14 {offsets = [0, 64], sizes = [16, 64], strides = [1, 1]} : vector<32x128xf32> to vector<16x64xf32>
    %43 = arith.truncf %40 : vector<16x64xf32> to vector<16x64xbf16>
    %44 = arith.truncf %41 : vector<16x64xf32> to vector<16x64xbf16>
    %cst_15 = arith.constant dense<0.000000e+00> : vector<16x16xf32>
    %45 = tpu.matmul %43, %44, %cst_15 {dimension_numbers = #tpu.dot_dimension_numbers<[1], [1], [0], [0], [0, 0, 1, 0], [], []>} : vector<16x64xbf16>, vector<16x64xbf16>, vector<16x16xf32> -> vector<16x16xf32>
    %cst_16 = arith.constant 1.250000e-01 : f32
    %46 = vector.broadcast %cst_16 : f32 to vector<16x16xf32>
    %47 = arith.mulf %45, %46 : vector<16x16xf32>
    %48 = vector.broadcast %16 : vector<1x16xf32> to vector<16x16xf32>
    %49 = arith.addf %47, %48 : vector<16x16xf32>
    %cst_17 = arith.constant dense<0xFF800000> : vector<16xf32>
    %50 = vector.multi_reduction <maximumf>, %49, %cst_17 [1] : vector<16x16xf32> to vector<16xf32>
    %51 = vector.shape_cast %50 : vector<16xf32> to vector<16x1xf32>
    %52 = vector.broadcast %51 : vector<16x1xf32> to vector<16x16xf32>
    %53 = arith.subf %49, %52 : vector<16x16xf32>
    %54 = math.exp %53 : vector<16x16xf32>
    %cst_18 = arith.constant dense<0.000000e+00> : vector<16xf32>
    %55 = vector.multi_reduction <add>, %54, %cst_18 [1] : vector<16x16xf32> to vector<16xf32>
    %56 = vector.shape_cast %55 : vector<16xf32> to vector<16x1xf32>
    %57 = tpu.reciprocal %56 {approx = true} : vector<16x1xf32> -> vector<16x1xf32>
    %58 = vector.broadcast %57 : vector<16x1xf32> to vector<16x16xf32>
    %59 = arith.mulf %54, %58 : vector<16x16xf32>
    %60 = arith.truncf %59 : vector<16x16xf32> to vector<16x16xbf16>
    %61 = arith.truncf %42 : vector<16x64xf32> to vector<16x64xbf16>
    %cst_19 = arith.constant dense<0.000000e+00> : vector<16x64xf32>
    %62 = tpu.matmul %60, %61, %cst_19 {dimension_numbers = #tpu.dot_dimension_numbers<[1], [0], [0], [1], [0, 0, 1, 1], [], []>} : vector<16x16xbf16>, vector<16x64xbf16>, vector<16x64xf32> -> vector<16x64xf32>
    %63 = tpu.concatenate %39, %62 in 1 : vector<16x64xf32>, vector<16x64xf32> -> vector<16x128xf32>
    %64 = vector.extract_strided_slice %15 {offsets = [1, 0], sizes = [1, 16], strides = [1, 1]} : vector<2x16xf32> to vector<1x16xf32>
    %65 = vector.extract_strided_slice %12 {offsets = [16, 0], sizes = [16, 64], strides = [1, 1]} : vector<32x128xf32> to vector<16x64xf32>
    %66 = vector.extract_strided_slice %13 {offsets = [16, 0], sizes = [16, 64], strides = [1, 1]} : vector<32x128xf32> to vector<16x64xf32>
    %67 = vector.extract_strided_slice %14 {offsets = [16, 0], sizes = [16, 64], strides = [1, 1]} : vector<32x128xf32> to vector<16x64xf32>
    %68 = arith.truncf %65 : vector<16x64xf32> to vector<16x64xbf16>
    %69 = arith.truncf %66 : vector<16x64xf32> to vector<16x64xbf16>
    %cst_20 = arith.constant dense<0.000000e+00> : vector<16x16xf32>
    %70 = tpu.matmul %68, %69, %cst_20 {dimension_numbers = #tpu.dot_dimension_numbers<[1], [1], [0], [0], [0, 0, 1, 0], [], []>} : vector<16x64xbf16>, vector<16x64xbf16>, vector<16x16xf32> -> vector<16x16xf32>
    %cst_21 = arith.constant 1.250000e-01 : f32
    %71 = vector.broadcast %cst_21 : f32 to vector<16x16xf32>
    %72 = arith.mulf %70, %71 : vector<16x16xf32>
    %73 = vector.broadcast %64 : vector<1x16xf32> to vector<16x16xf32>
    %74 = arith.addf %72, %73 : vector<16x16xf32>
    %cst_22 = arith.constant dense<0xFF800000> : vector<16xf32>
    %75 = vector.multi_reduction <maximumf>, %74, %cst_22 [1] : vector<16x16xf32> to vector<16xf32>
    %76 = vector.shape_cast %75 : vector<16xf32> to vector<16x1xf32>
    %77 = vector.broadcast %76 : vector<16x1xf32> to vector<16x16xf32>
    %78 = arith.subf %74, %77 : vector<16x16xf32>
    %79 = math.exp %78 : vector<16x16xf32>
    %cst_23 = arith.constant dense<0.000000e+00> : vector<16xf32>
    %80 = vector.multi_reduction <add>, %79, %cst_23 [1] : vector<16x16xf32> to vector<16xf32>
    %81 = vector.shape_cast %80 : vector<16xf32> to vector<16x1xf32>
    %82 = tpu.reciprocal %81 {approx = true} : vector<16x1xf32> -> vector<16x1xf32>
    %83 = vector.broadcast %82 : vector<16x1xf32> to vector<16x16xf32>
    %84 = arith.mulf %79, %83 : vector<16x16xf32>
    %85 = arith.truncf %84 : vector<16x16xf32> to vector<16x16xbf16>
    %86 = arith.truncf %67 : vector<16x64xf32> to vector<16x64xbf16>
    %cst_24 = arith.constant dense<0.000000e+00> : vector<16x64xf32>
    %87 = tpu.matmul %85, %86, %cst_24 {dimension_numbers = #tpu.dot_dimension_numbers<[1], [0], [0], [1], [0, 0, 1, 1], [], []>} : vector<16x16xbf16>, vector<16x64xbf16>, vector<16x64xf32> -> vector<16x64xf32>
    %88 = vector.extract_strided_slice %12 {offsets = [16, 64], sizes = [16, 64], strides = [1, 1]} : vector<32x128xf32> to vector<16x64xf32>
    %89 = vector.extract_strided_slice %13 {offsets = [16, 64], sizes = [16, 64], strides = [1, 1]} : vector<32x128xf32> to vector<16x64xf32>
    %90 = vector.extract_strided_slice %14 {offsets = [16, 64], sizes = [16, 64], strides = [1, 1]} : vector<32x128xf32> to vector<16x64xf32>
    %91 = arith.truncf %88 : vector<16x64xf32> to vector<16x64xbf16>
    %92 = arith.truncf %89 : vector<16x64xf32> to vector<16x64xbf16>
    %cst_25 = arith.constant dense<0.000000e+00> : vector<16x16xf32>
    %93 = tpu.matmul %91, %92, %cst_25 {dimension_numbers = #tpu.dot_dimension_numbers<[1], [1], [0], [0], [0, 0, 1, 0], [], []>} : vector<16x64xbf16>, vector<16x64xbf16>, vector<16x16xf32> -> vector<16x16xf32>
    %cst_26 = arith.constant 1.250000e-01 : f32
    %94 = vector.broadcast %cst_26 : f32 to vector<16x16xf32>
    %95 = arith.mulf %93, %94 : vector<16x16xf32>
    %96 = vector.broadcast %64 : vector<1x16xf32> to vector<16x16xf32>
    %97 = arith.addf %95, %96 : vector<16x16xf32>
    %cst_27 = arith.constant dense<0xFF800000> : vector<16xf32>
    %98 = vector.multi_reduction <maximumf>, %97, %cst_27 [1] : vector<16x16xf32> to vector<16xf32>
    %99 = vector.shape_cast %98 : vector<16xf32> to vector<16x1xf32>
    %100 = vector.broadcast %99 : vector<16x1xf32> to vector<16x16xf32>
    %101 = arith.subf %97, %100 : vector<16x16xf32>
    %102 = math.exp %101 : vector<16x16xf32>
    %cst_28 = arith.constant dense<0.000000e+00> : vector<16xf32>
    %103 = vector.multi_reduction <add>, %102, %cst_28 [1] : vector<16x16xf32> to vector<16xf32>
    %104 = vector.shape_cast %103 : vector<16xf32> to vector<16x1xf32>
    %105 = tpu.reciprocal %104 {approx = true} : vector<16x1xf32> -> vector<16x1xf32>
    %106 = vector.broadcast %105 : vector<16x1xf32> to vector<16x16xf32>
    %107 = arith.mulf %102, %106 : vector<16x16xf32>
    %108 = arith.truncf %107 : vector<16x16xf32> to vector<16x16xbf16>
    %109 = arith.truncf %90 : vector<16x64xf32> to vector<16x64xbf16>
    %cst_29 = arith.constant dense<0.000000e+00> : vector<16x64xf32>
    %110 = tpu.matmul %108, %109, %cst_29 {dimension_numbers = #tpu.dot_dimension_numbers<[1], [0], [0], [1], [0, 0, 1, 1], [], []>} : vector<16x16xbf16>, vector<16x64xbf16>, vector<16x64xf32> -> vector<16x64xf32>
    %111 = tpu.concatenate %87, %110 in 1 : vector<16x64xf32>, vector<16x64xf32> -> vector<16x128xf32>
    %112 = tpu.concatenate %63, %111 in 0 : vector<16x128xf32>, vector<16x128xf32> -> vector<32x128xf32>
    %c0_30 = arith.constant 0 : index
    %c0_31 = arith.constant 0 : index
    %c0_32 = arith.constant 0 : index
    %113 = vector.load %arg7[%c0_30, %c0_31, %c0_32] : memref<1x128x128xbf16, #tpu.memory_space<vmem>>, vector<1x128x128xbf16>
    %114 = vector.shape_cast %113 : vector<1x128x128xbf16> to vector<128x128xbf16>
    %c0_33 = arith.constant 0 : index
    %c0_34 = arith.constant 0 : index
    %c0_35 = arith.constant 0 : index
    %115 = vector.load %arg8[%c0_33, %c0_34, %c0_35] : memref<1x1x128xf32, #tpu.memory_space<vmem>>, vector<1x1x128xf32>
    %116 = vector.shape_cast %115 : vector<1x1x128xf32> to vector<1x128xf32>
    %117 = arith.truncf %112 : vector<32x128xf32> to vector<32x128xbf16>
    %cst_36 = arith.constant dense<0.000000e+00> : vector<32x128xf32>
    %118 = tpu.matmul %117, %114, %cst_36 {dimension_numbers = #tpu.dot_dimension_numbers<[1], [0], [0], [1], [0, 0, 1, 1], [], []>} : vector<32x128xbf16>, vector<128x128xbf16>, vector<32x128xf32> -> vector<32x128xf32>
    %119 = vector.broadcast %116 : vector<1x128xf32> to vector<32x128xf32>
    %120 = arith.addf %118, %119 : vector<32x128xf32>
    %121 = arith.addf %120, %3 : vector<32x128xf32>
    %c0_37 = arith.constant 0 : index
    %c0_38 = arith.constant 0 : index
    %c0_39 = arith.constant 0 : index
    %122 = vector.load %arg9[%c0_37, %c0_38, %c0_39] : memref<1x1x128xf32, #tpu.memory_space<vmem>>, vector<1x1x128xf32>
    %123 = vector.shape_cast %122 : vector<1x1x128xf32> to vector<1x128xf32>
    %c0_40 = arith.constant 0 : index
    %c0_41 = arith.constant 0 : index
    %c0_42 = arith.constant 0 : index
    %124 = vector.load %arg10[%c0_40, %c0_41, %c0_42] : memref<1x1x128xf32, #tpu.memory_space<vmem>>, vector<1x1x128xf32>
    %125 = vector.shape_cast %124 : vector<1x1x128xf32> to vector<1x128xf32>
    %cst_43 = arith.constant dense<0.000000e+00> : vector<32xf32>
    %126 = vector.multi_reduction <add>, %121, %cst_43 [1] : vector<32x128xf32> to vector<32xf32>
    %127 = vector.shape_cast %126 : vector<32xf32> to vector<32x1xf32>
    %cst_44 = arith.constant 1.280000e+02 : f32
    %128 = vector.broadcast %cst_44 : f32 to vector<32x1xf32>
    %129 = arith.divf %127, %128 : vector<32x1xf32>
    %130 = vector.broadcast %129 : vector<32x1xf32> to vector<32x128xf32>
    %131 = arith.subf %121, %130 : vector<32x128xf32>
    %132 = arith.mulf %131, %131 : vector<32x128xf32>
    %cst_45 = arith.constant dense<0.000000e+00> : vector<32xf32>
    %133 = vector.multi_reduction <add>, %132, %cst_45 [1] : vector<32x128xf32> to vector<32xf32>
    %134 = vector.shape_cast %133 : vector<32xf32> to vector<32x1xf32>
    %cst_46 = arith.constant 1.280000e+02 : f32
    %135 = vector.broadcast %cst_46 : f32 to vector<32x1xf32>
    %136 = arith.divf %134, %135 : vector<32x1xf32>
    %137 = vector.broadcast %129 : vector<32x1xf32> to vector<32x128xf32>
    %138 = arith.subf %121, %137 : vector<32x128xf32>
    %cst_47 = arith.constant 9.99999996E-13 : f32
    %139 = vector.broadcast %cst_47 : f32 to vector<32x1xf32>
    %140 = arith.addf %136, %139 : vector<32x1xf32>
    %141 = math.rsqrt %140 : vector<32x1xf32>
    %142 = vector.broadcast %141 : vector<32x1xf32> to vector<32x128xf32>
    %143 = arith.mulf %138, %142 : vector<32x128xf32>
    %144 = vector.broadcast %123 : vector<1x128xf32> to vector<32x128xf32>
    %145 = arith.mulf %143, %144 : vector<32x128xf32>
    %146 = vector.broadcast %125 : vector<1x128xf32> to vector<32x128xf32>
    %147 = arith.addf %145, %146 : vector<32x128xf32>
    %c0_48 = arith.constant 0 : index
    %c0_49 = arith.constant 0 : index
    %c0_50 = arith.constant 0 : index
    %148 = vector.load %arg11[%c0_48, %c0_49, %c0_50] : memref<1x128x256xbf16, #tpu.memory_space<vmem>>, vector<1x128x256xbf16>
    %149 = vector.shape_cast %148 : vector<1x128x256xbf16> to vector<128x256xbf16>
    %c0_51 = arith.constant 0 : index
    %c0_52 = arith.constant 0 : index
    %c0_53 = arith.constant 0 : index
    %150 = vector.load %arg12[%c0_51, %c0_52, %c0_53] : memref<1x1x256xf32, #tpu.memory_space<vmem>>, vector<1x1x256xf32>
    %151 = vector.shape_cast %150 : vector<1x1x256xf32> to vector<1x256xf32>
    %152 = arith.truncf %147 : vector<32x128xf32> to vector<32x128xbf16>
    %cst_54 = arith.constant dense<0.000000e+00> : vector<32x256xf32>
    %153 = tpu.matmul %152, %149, %cst_54 {dimension_numbers = #tpu.dot_dimension_numbers<[1], [0], [0], [1], [0, 0, 1, 1], [], []>} : vector<32x128xbf16>, vector<128x256xbf16>, vector<32x256xf32> -> vector<32x256xf32>
    %154 = vector.broadcast %151 : vector<1x256xf32> to vector<32x256xf32>
    %155 = arith.addf %153, %154 : vector<32x256xf32>
    %cst_55 = arith.constant 5.000000e-01 : f32
    %156 = vector.broadcast %cst_55 : f32 to vector<32x256xf32>
    %157 = arith.mulf %156, %155 : vector<32x256xf32>
    %cst_56 = arith.constant 4.471500e-02 : f32
    %158 = vector.broadcast %cst_56 : f32 to vector<32x256xf32>
    %159 = arith.mulf %158, %155 : vector<32x256xf32>
    %160 = arith.mulf %159, %155 : vector<32x256xf32>
    %161 = arith.mulf %160, %155 : vector<32x256xf32>
    %162 = arith.addf %155, %161 : vector<32x256xf32>
    %cst_57 = arith.constant 0.797884583 : f32
    %163 = vector.broadcast %cst_57 : f32 to vector<32x256xf32>
    %164 = arith.mulf %163, %162 : vector<32x256xf32>
    %165 = math.tanh %164 : vector<32x256xf32>
    %cst_58 = arith.constant 1.000000e+00 : f32
    %166 = vector.broadcast %cst_58 : f32 to vector<32x256xf32>
    %167 = arith.addf %166, %165 : vector<32x256xf32>
    %168 = arith.mulf %157, %167 : vector<32x256xf32>
    %c0_59 = arith.constant 0 : index
    %c0_60 = arith.constant 0 : index
    %c0_61 = arith.constant 0 : index
    %169 = vector.load %arg13[%c0_59, %c0_60, %c0_61] : memref<1x256x128xbf16, #tpu.memory_space<vmem>>, vector<1x256x128xbf16>
    %170 = vector.shape_cast %169 : vector<1x256x128xbf16> to vector<256x128xbf16>
    %c0_62 = arith.constant 0 : index
    %c0_63 = arith.constant 0 : index
    %c0_64 = arith.constant 0 : index
    %171 = vector.load %arg14[%c0_62, %c0_63, %c0_64] : memref<1x1x128xf32, #tpu.memory_space<vmem>>, vector<1x1x128xf32>
    %172 = vector.shape_cast %171 : vector<1x1x128xf32> to vector<1x128xf32>
    %173 = arith.truncf %168 : vector<32x256xf32> to vector<32x256xbf16>
    %cst_65 = arith.constant dense<0.000000e+00> : vector<32x128xf32>
    %174 = tpu.matmul %173, %170, %cst_65 {dimension_numbers = #tpu.dot_dimension_numbers<[1], [0], [0], [1], [0, 0, 1, 1], [], []>} : vector<32x256xbf16>, vector<256x128xbf16>, vector<32x128xf32> -> vector<32x128xf32>
    %175 = vector.broadcast %172 : vector<1x128xf32> to vector<32x128xf32>
    %176 = arith.addf %174, %175 : vector<32x128xf32>
    %177 = arith.addf %176, %147 : vector<32x128xf32>
    %c0_66 = arith.constant 0 : index
    %c0_67 = arith.constant 0 : index
    %c0_68 = arith.constant 0 : index
    %178 = vector.load %arg15[%c0_66, %c0_67, %c0_68] : memref<1x1x128xf32, #tpu.memory_space<vmem>>, vector<1x1x128xf32>
    %179 = vector.shape_cast %178 : vector<1x1x128xf32> to vector<1x128xf32>
    %c0_69 = arith.constant 0 : index
    %c0_70 = arith.constant 0 : index
    %c0_71 = arith.constant 0 : index
    %180 = vector.load %arg16[%c0_69, %c0_70, %c0_71] : memref<1x1x128xf32, #tpu.memory_space<vmem>>, vector<1x1x128xf32>
    %181 = vector.shape_cast %180 : vector<1x1x128xf32> to vector<1x128xf32>
    %cst_72 = arith.constant dense<0.000000e+00> : vector<32xf32>
    %182 = vector.multi_reduction <add>, %177, %cst_72 [1] : vector<32x128xf32> to vector<32xf32>
    %183 = vector.shape_cast %182 : vector<32xf32> to vector<32x1xf32>
    %cst_73 = arith.constant 1.280000e+02 : f32
    %184 = vector.broadcast %cst_73 : f32 to vector<32x1xf32>
    %185 = arith.divf %183, %184 : vector<32x1xf32>
    %186 = vector.broadcast %185 : vector<32x1xf32> to vector<32x128xf32>
    %187 = arith.subf %177, %186 : vector<32x128xf32>
    %188 = arith.mulf %187, %187 : vector<32x128xf32>
    %cst_74 = arith.constant dense<0.000000e+00> : vector<32xf32>
    %189 = vector.multi_reduction <add>, %188, %cst_74 [1] : vector<32x128xf32> to vector<32xf32>
    %190 = vector.shape_cast %189 : vector<32xf32> to vector<32x1xf32>
    %cst_75 = arith.constant 1.280000e+02 : f32
    %191 = vector.broadcast %cst_75 : f32 to vector<32x1xf32>
    %192 = arith.divf %190, %191 : vector<32x1xf32>
    %193 = vector.broadcast %185 : vector<32x1xf32> to vector<32x128xf32>
    %194 = arith.subf %177, %193 : vector<32x128xf32>
    %cst_76 = arith.constant 9.99999996E-13 : f32
    %195 = vector.broadcast %cst_76 : f32 to vector<32x1xf32>
    %196 = arith.addf %192, %195 : vector<32x1xf32>
    %197 = math.rsqrt %196 : vector<32x1xf32>
    %198 = vector.broadcast %197 : vector<32x1xf32> to vector<32x128xf32>
    %199 = arith.mulf %194, %198 : vector<32x128xf32>
    %200 = vector.broadcast %179 : vector<1x128xf32> to vector<32x128xf32>
    %201 = arith.mulf %199, %200 : vector<32x128xf32>
    %202 = vector.broadcast %181 : vector<1x128xf32> to vector<32x128xf32>
    %203 = arith.addf %201, %202 : vector<32x128xf32>
    %c0_77 = arith.constant 0 : index
    %c0_78 = arith.constant 0 : index
    %204 = vector.load %arg17[%c0_77, %c0_78] : memref<32x128xf32, #tpu.memory_space<vmem>>, vector<32x128xf32>
    tpu.vector_store %arg17[%c0_77, %c0_78], %203 {strides = array<i32>} : memref<32x128xf32, #tpu.memory_space<vmem>>, vector<32x128xf32>,
    return
  }
  func.func @transform_0(%arg0: i32) -> (i32, i32) {
    %c0_i32 = arith.constant 0 : i32
    %c0_i32_0 = arith.constant 0 : i32
    %c0_i32_1 = arith.constant 0 : i32
    return %c0_i32, %c0_i32_0 : i32, i32
  }
  func.func @transform_1(%arg0: i32) -> (i32, i32) {
    %c0_i32 = arith.constant 0 : i32
    %c0_i32_0 = arith.constant 0 : i32
    %c0_i32_1 = arith.constant 0 : i32
    return %c0_i32, %c0_i32_0 : i32, i32
  }
  func.func @transform_2(%arg0: i32) -> (i32, i32) {
    %c0_i32 = arith.constant 0 : i32
    %c0_i32_0 = arith.constant 0 : i32
    %c0_i32_1 = arith.constant 0 : i32
    return %c0_i32, %c0_i32_0 : i32, i32
  }
  func.func @transform_3(%arg0: i32) -> (i32, i32) {
    %c0_i32 = arith.constant 0 : i32
    %c0_i32_0 = arith.constant 0 : i32
    %c0_i32_1 = arith.constant 0 : i32
    return %c0_i32, %c0_i32_0 : i32, i32
  }
  func.func @transform_4(%arg0: i32) -> (i32, i32, i32) {
    %c0_i32 = arith.constant 0 : i32
    %c0_i32_0 = arith.constant 0 : i32
    %c0_i32_1 = arith.constant 0 : i32
    return %arg0, %c0_i32, %c0_i32_0 : i32, i32, i32
  }
  func.func @transform_5(%arg0: i32) -> (i32, i32, i32) {
    %c0_i32 = arith.constant 0 : i32
    %c0_i32_0 = arith.constant 0 : i32
    %c0_i32_1 = arith.constant 0 : i32
    return %arg0, %c0_i32, %c0_i32_0 : i32, i32, i32
  }
  func.func @transform_6(%arg0: i32) -> (i32, i32, i32) {
    %c0_i32 = arith.constant 0 : i32
    %c0_i32_0 = arith.constant 0 : i32
    %c0_i32_1 = arith.constant 0 : i32
    return %arg0, %c0_i32, %c0_i32_0 : i32, i32, i32
  }
  func.func @transform_7(%arg0: i32) -> (i32, i32, i32) {
    %c0_i32 = arith.constant 0 : i32
    %c0_i32_0 = arith.constant 0 : i32
    %c0_i32_1 = arith.constant 0 : i32
    return %arg0, %c0_i32, %c0_i32_0 : i32, i32, i32
  }
  func.func @transform_8(%arg0: i32) -> (i32, i32, i32) {
    %c0_i32 = arith.constant 0 : i32
    %c0_i32_0 = arith.constant 0 : i32
    %c0_i32_1 = arith.constant 0 : i32
    return %arg0, %c0_i32, %c0_i32_0 : i32, i32, i32
  }
  func.func @transform_9(%arg0: i32) -> (i32, i32, i32) {
    %c0_i32 = arith.constant 0 : i32
    %c0_i32_0 = arith.constant 0 : i32
    %c0_i32_1 = arith.constant 0 : i32
    return %arg0, %c0_i32, %c0_i32_0 : i32, i32, i32
  }
  func.func @transform_10(%arg0: i32) -> (i32, i32, i32) {
    %c0_i32 = arith.constant 0 : i32
    %c0_i32_0 = arith.constant 0 : i32
    %c0_i32_1 = arith.constant 0 : i32
    return %arg0, %c0_i32, %c0_i32_0 : i32, i32, i32
  }
  func.func @transform_11(%arg0: i32) -> (i32, i32, i32) {
    %c0_i32 = arith.constant 0 : i32
    %c0_i32_0 = arith.constant 0 : i32
    %c0_i32_1 = arith.constant 0 : i32
    return %arg0, %c0_i32, %c0_i32_0 : i32, i32, i32
  }
  func.func @transform_12(%arg0: i32) -> (i32, i32, i32) {
    %c0_i32 = arith.constant 0 : i32
    %c0_i32_0 = arith.constant 0 : i32
    %c0_i32_1 = arith.constant 0 : i32
    return %arg0, %c0_i32, %c0_i32_0 : i32, i32, i32
  }
  func.func @transform_13(%arg0: i32) -> (i32, i32, i32) {
    %c0_i32 = arith.constant 0 : i32
    %c0_i32_0 = arith.constant 0 : i32
    %c0_i32_1 = arith.constant 0 : i32
    return %arg0, %c0_i32, %c0_i32_0 : i32, i32, i32
  }
  func.func @transform_14(%arg0: i32) -> (i32, i32, i32) {
    %c0_i32 = arith.constant 0 : i32
    %c0_i32_0 = arith.constant 0 : i32
    %c0_i32_1 = arith.constant 0 : i32
    return %arg0, %c0_i32, %c0_i32_0 : i32, i32, i32
  }
  func.func @transform_15(%arg0: i32) -> (i32, i32, i32) {
    %c0_i32 = arith.constant 0 : i32
    %c0_i32_0 = arith.constant 0 : i32
    %c0_i32_1 = arith.constant 0 : i32
    return %arg0, %c0_i32, %c0_i32_0 : i32, i32, i32
  }
  func.func @transform_16(%arg0: i32) -> (i32, i32) {
    %c0_i32 = arith.constant 0 : i32
    %c0_i32_0 = arith.constant 0 : i32
    %c0_i32_1 = arith.constant 0 : i32
    return %c0_i32, %c0_i32_0 : i32, i32
  }
}

</mosaic_0001>

<bundles_post_ra>
// kernel: bert_classification_forward.3
= control target key start
LH: loop header
LB: loop body
LE: loop exit
PB: predicated region body
PF: predicated region fallthrough
CT: control target
= control target key end

     0   :  { %v549_v1 = vmov 0.0   ;;  %vm550_vm0 = vmmov 0   ;;  %s718_s0 = inlined_call_operand.vmem [shape: f32[2,128], index: 0, kind: input, shape index: {}]   ;;  %s719_s1 = inlined_call_operand.vmem [shape: bf16[128,128], index: 1, kind: input, shape index: {}]   ;;  %s720_s2 = inlined_call_operand.vmem [shape: f32[1,128], index: 2, kind: input, shape index: {}]   ;;  %s721_s3 = inlined_call_operand.vmem [shape: bf16[128,128], index: 3, kind: input, shape index: {}]   ;;  %s722_s4 = inlined_call_operand.vmem [shape: f32[1,128], index: 4, kind: input, shape index: {}]   ;;  %s723_s5 = inlined_call_operand.vmem [shape: bf16[128,128], index: 5, kind: input, shape index: {}]   ;;  %s724_s6 = inlined_call_operand.vmem [shape: f32[1,128], index: 6, kind: input, shape index: {}]   ;;  %s725_s7 = inlined_call_operand.hbm [shape: f32[2,128], index: 7, kind: output, shape index: {}]  }
   0x1   :  { %v499_v0 = vld [vmem:[%s719_s1] sm:$0xff]   ;;  %436 = vmatprep.subr.bf16.mxu0 %v549_v1  ;;  %456 = vmatprep.subr.bf16.mxu1 %v549_v1  ;;  %v500_v2 = vld [vmem:[%s719_s1 + $0x8] sm:$0xff]   ;;  %v501_v3 = vld [vmem:[%s719_s1 + $0x10] sm:$0xff]  }
   0x2   :  { %437 = vmatpush3.bf16.msra.mxu0 %v499_v0  ;;  %452 = vmatprep.mubr.msk.bf16.mxu0 %vm550_vm0, %v549_v1  ;;  %v507_v4 = vld [vmem:[%s721_s3] sm:$0xff]   ;;  %v502_v5 = vld [vmem:[%s719_s1 + $0x18] sm:$0xff]   ;;  %v508_v6 = vld [vmem:[%s721_s3 + $0x8] sm:$0xff]  }
   0x3   :  { %438 = vmatprep.subr.bf16.mxu0 %v549_v1  ;;  %472 = vmatprep.mubr.msk.bf16.mxu1 %vm550_vm0, %v549_v1  ;;  %v503_v7 = vld [vmem:[%s719_s1 + $0x20] sm:$0xff]   ;;  %v509_v8 = vld [vmem:[%s721_s3 + $0x10] sm:$0xff]   ;;  %v504_v9 = vld [vmem:[%s719_s1 + $0x28] sm:$0xff]  }
   0x4   :  { %457 = vmatpush3.bf16.msra.mxu1 %v507_v4  ;;  %v510_v10 = vld [vmem:[%s721_s3 + $0x18] sm:$0xff]  }
   0x5   :  { %458 = vmatprep.subr.bf16.mxu1 %v549_v1 }
   0x6   :  { %439 = vmatpush3.bf16.msra.mxu0 %v500_v2 }
   0x7   :  { %440 = vmatprep.subr.bf16.mxu0 %v549_v1 }
   0x8   :  { %459 = vmatpush3.bf16.msra.mxu1 %v508_v6 }
   0x9   :  { %460 = vmatprep.subr.bf16.mxu1 %v549_v1 }
   0xa   :  { %441 = vmatpush3.bf16.msra.mxu0 %v501_v3 }
   0xb   :  { %442 = vmatprep.subr.bf16.mxu0 %v549_v1 }
   0xc   :  { %461 = vmatpush3.bf16.msra.mxu1 %v509_v8 }
   0xd   :  { %462 = vmatprep.subr.bf16.mxu1 %v549_v1 }
   0xe   :  { %443 = vmatpush3.bf16.msra.mxu0 %v502_v5 }
   0xf   :  { %444 = vmatprep.subr.bf16.mxu0 %v549_v1 }
  0x12   :  { %445 = vmatpush3.bf16.msra.mxu0 %v503_v7 }
  0x13   :  { %446 = vmatprep.subr.bf16.mxu0 %v549_v1 }
  0x14   :  { %12 = vsyncpa [#allocation3], 0  ;;  %v505_v11 = vld [vmem:[%s719_s1 + $0x30] sm:$0xff]   ;;  %463 = vmatpush3.bf16.msra.mxu1 %v510_v10  ;;  %v506_v12 = vld [vmem:[%s719_s1 + $0x38] sm:$0xff]   ;;  %s551_s29 = smov [#allocation2]  }
  0x15   :  { %464 = vmatprep.subr.bf16.mxu1 %v549_v1  ;;  %v28_v13 = vld [vmem:[%s718_s0] sm:$0x3]  ;;  %v512_v16 = vld [vmem:[%s721_s3 + $0x28] sm:$0xff]   ;;  %v513_v17 = vld [vmem:[%s721_s3 + $0x30] sm:$0xff]   ;;  %s374_s0 = sshll.u32 %s551_s29, 4  ;;  %s375_s0 = int_to_ptr.vmem [resolvable:$true] %s374_s0 }
  0x16   :  { %447 = vmatpush3.bf16.msra.mxu0 %v504_v9  ;;  %v46_v14 = vpack.c.bf16 %v28_v13, %v28_v13  ;;  %v511_v15 = vld [vmem:[%s721_s3 + $0x20] sm:$0xff]   ;;  %v514_v18 = vld [vmem:[%s721_s3 + $0x38] sm:$0xff]   ;;  %v516_v20 = vld [vmem:[%s723_s5 + $0x8] sm:$0xff]   ;;  %p530_p1 = scmp.lt.s32.totalorder %s375_s0, %s375_s0 }
  0x17   :  { %448 = vmatprep.subr.bf16.mxu0 %v549_v1  ;;  %v515_v19 = vld [vmem:[%s723_s5] sm:$0xff]   ;;  %v517_v21 = vld [vmem:[%s723_s5 + $0x10] sm:$0xff]   ;;  %v518_v22 = vld [vmem:[%s723_s5 + $0x18] sm:$0xff]  }
  0x18   :  { %465 = vmatpush3.bf16.msra.mxu1 %v511_v15  ;;  %v519_v23 = vld [vmem:[%s723_s5 + $0x20] sm:$0xff]   ;;  %v520_v24 = vld [vmem:[%s723_s5 + $0x28] sm:$0xff]   ;;  %v521_v33 = vld [vmem:[%s723_s5 + $0x30] sm:$0xff]  }
  0x19   :  { %466 = vmatprep.subr.bf16.mxu1 %v549_v1  ;;  %v382_v25 = vld [vmem:[%s720_s2] ss:$0 sm:$0xff]  ;;  %v522_v34 = vld [vmem:[%s723_s5 + $0x38] sm:$0xff]  }
  0x1a   :  { %449 = vmatpush3.bf16.msra.mxu0 %v505_v11  ;;  %v391_v35 = vld [vmem:[%s722_s4] ss:$0 sm:$0xff]  ;;  %s525_s4 = scalar_lea.vmem %s375_s0, 32 }
  0x1b   :  { %450 = vmatprep.subr.bf16.mxu0 %v549_v1  ;;  %v400_v43 = vld [vmem:[%s724_s6] ss:$0 sm:$0xff]  ;;  %p526_p0 = scmp.ne.s32.totalorder %s375_s0, %s525_s4  ;;  %p531_p2 = scmp.lt.s32.totalorder %s525_s4, %s525_s4 }
  0x1c   :  { %467 = vmatpush3.bf16.msra.mxu1 %v512_v16 }
  0x1d   :  { %468 = vmatprep.subr.bf16.mxu1 %v549_v1  ;;  %p532_p3 = por %p531_p2, %p530_p1 }
  0x1e   :  { %451 = vmatpush3.bf16.msra.mxu0 %v506_v12 }
  0x1f   :  { %476 = vmatprep.subr.bf16.mxu0 %v549_v1  ;;  %p533_p4 = pnand %p532_p3, %p526_p0 }
  0x20   :  { %469 = vmatpush3.bf16.msra.mxu1 %v513_v17 }
  0x21   :  { %453 = vmatmul.mubr.bf16.vlgmr.msra.gmra.mrb[0].mxu0 %v46_v14  ;;  %470 = vmatprep.subr.bf16.mxu1 %v549_v1 }
  0x22   :  { %492 = vmatprep.mubr.msk.bf16.mxu0 %vm550_vm0, %v549_v1  ;;  %477 = vmatpush3.bf16.msra.mxu0 %v515_v19 }
  0x23   :  { %478 = vmatprep.subr.bf16.mxu0 %v549_v1 }
  0x24   :  { %471 = vmatpush3.bf16.msra.mxu1 %v514_v18 }
  0x26   :  { %479 = vmatpush3.bf16.msra.mxu0 %v516_v20 }
  0x27   :  { %480 = vmatprep.subr.bf16.mxu0 %v549_v1 }
  0x2a   :  { %481 = vmatpush3.bf16.msra.mxu0 %v517_v21 }
  0x2b   :  { %482 = vmatprep.subr.bf16.mxu0 %v549_v1 }
  0x2e   :  { %483 = vmatpush3.bf16.msra.mxu0 %v518_v22 }
  0x2f   :  { %484 = vmatprep.subr.bf16.mxu0 %v549_v1 }
  0x32   :  { %485 = vmatpush3.bf16.msra.mxu0 %v519_v23 }
  0x33   :  { %486 = vmatprep.subr.bf16.mxu0 %v549_v1 }
  0x36   :  { %487 = vmatpush3.bf16.msra.mxu0 %v520_v24 }
  0x37   :  { %488 = vmatprep.subr.bf16.mxu0 %v549_v1 }
  0x3a   :  { %489 = vmatpush3.bf16.msra.mxu0 %v521_v33 }
  0x3b   :  { %490 = vmatprep.subr.bf16.mxu0 %v549_v1 }
  0x3e   :  { %491 = vmatpush3.bf16.msra.mxu0 %v522_v34 }
  0xf4   :  { %v135_v26 = vpop.f32.mrb[0].mxu0 }
  0xf5   :  { %v136_v27 = vadd.f32 %v382_v25, %v135_v26  ;;  %v454_v28 = vpop.f32.mrb[1].mxu0 }
  0xf6   :  { %v138_v29 = vpop.f32.mrb[2].mxu0 }
  0xf7   :  { %523 = vtanh.f32 %v136_v27  ;;  %v455_v30 = vpop.f32.mrb[3].mxu0 }
 0x101   :  { %v524_v31 = vpop.eup %523 }
 0x102   :  { %v159_v32 = vpack.c.bf16 %v524_v31, %v524_v31 }
 0x104   :  { %473 = vmatmul.mubr.bf16.vlgmr.msra.gmra.mrb[0].mxu1 %v159_v32 }
 0x1d7   :  { %v248_v36 = vpop.f32.mrb[0].mxu1 }
 0x1d8   :  { %v249_v37 = vadd.f32 %v391_v35, %v248_v36  ;;  %v474_v38 = vpop.f32.mrb[1].mxu1 }
 0x1d9   :  { %v251_v39 = vpop.f32.mrb[2].mxu1 }
 0x1da   :  { %v254_v40 = vmax.f32 %v249_v37, 0.0  ;;  %v475_v41 = vpop.f32.mrb[3].mxu1 }
 0x1dc   :  { %v272_v42 = vpack.c.bf16 %v254_v40, %v254_v40 }
 0x1de   :  { %493 = vmatmul.mubr.bf16.vlgmr.msra.gmra.mrb[4].mxu0 %v272_v42 }
 0x2b1   :  { %v361_v44 = vpop.f32.mrb[4].mxu0 }
 0x2b2   :  { %v362_v45 = vadd.f32 %v400_v43, %v361_v44  ;;  %v494_v46 = vpop.f32.mrb[5].mxu0 }
 0x2b3   :  { %v364_v47 = vpop.f32.mrb[6].mxu0 }
 0x2b4   :  { %367 = vst [vmem:[#allocation2] sm:$0x3] %v362_v45  ;;  %v495_v48 = vpop.f32.mrb[7].mxu0 }
 0x2b5   :  { %536 = shalt.err (!%p533_p4)
}
 0x2b6   :  { %s537_s6 = scalar_lea.hbm %s725_s7, 32 }
 0x2b7   :  { %p538_p5 = scmp.ne.s32.totalorder %s725_s7, %s537_s6  ;;  %p541_p6 = scmp.lt.u32.totalorder %s537_s6, %s725_s7 }
 0x2b9   :  { %p543_p7 = pnand %p541_p6, %p538_p5 }
 0x2bb   :  { %546 = shalt.err (!%p543_p7)
}
 0x2bc   :  { %377 = dma.vmem_to_hbm [thread:$0]  %s375_s0, 32, %s725_s7, [#allocation3]  }
 0x2bd   :  { %547 = dma.done.wait [#allocation3], 32  }
 0x2be   :  { %548 = vsyncadd [#allocation3], 4294967264 }
 0x2bf   :  { %381 = vsyncpa [#allocation3], 1 }

// kernel: bert_classification_forward.2
= control target key start
LH: loop header
LB: loop body
LE: loop exit
PB: predicated region body
PF: predicated region fallthrough
CT: control target
= control target key end

     0   :  { %s3538_s0 = inlined_call_operand.vmem [shape: f32[32,128], index: 0, kind: input, shape index: {}]   ;;  %s3539_s1 = inlined_call_operand.vmem [shape: f32[2,16], index: 1, kind: input, shape index: {}]   ;;  %s3540_s2 = inlined_call_operand.vmem [shape: f32[1,128], index: 2, kind: input, shape index: {}]   ;;  %s3541_s3 = inlined_call_operand.vmem [shape: f32[1,128], index: 3, kind: input, shape index: {}]   ;;  %s3542_s4 = inlined_call_operand.vmem [shape: bf16[2,128,384], index: 4, kind: input, shape index: {}]   ;;  %s3543_s5 = inlined_call_operand.vmem [shape: f32[2,1,384], index: 5, kind: input, shape index: {}]   ;;  %s3544_s6 = inlined_call_operand.vmem [shape: bf16[2,128,128], index: 6, kind: input, shape index: {}]   ;;  %s3545_s7 = inlined_call_operand.vmem [shape: f32[2,1,128], index: 7, kind: input, shape index: {}]   ;;  %s3546_s8 = inlined_call_operand.vmem [shape: f32[2,1,128], index: 8, kind: input, shape index: {}]   ;;  %s3547_s9 = inlined_call_operand.vmem [shape: f32[2,1,128], index: 9, kind: input, shape index: {}]   ;;  %s3548_s10 = inlined_call_operand.vmem [shape: bf16[2,128,256], index: 10, kind: input, shape index: {}]   ;;  %s3549_s11 = inlined_call_operand.vmem [shape: f32[2,1,256], index: 11, kind: input, shape index: {}]   ;;  %s3550_s12 = inlined_call_operand.hbm [shape: bf16[2,256,128], index: 12, kind: input, shape index: {}]   ;;  %s3551_s13 = inlined_call_operand.vmem [shape: f32[2,1,128], index: 13, kind: input, shape index: {}]   ;;  %s3552_s14 = inlined_call_operand.vmem [shape: f32[2,1,128], index: 14, kind: input, shape index: {}]   ;;  %s3553_s15 = inlined_call_operand.vmem [shape: f32[2,1,128], index: 15, kind: input, shape index: {}]   ;;  %s3554_s16 = inlined_call_operand.vmem [shape: f32[32,128], index: 16, kind: output, shape index: {}]  }
   0x1   :  { %3563 = sst [smem:[#allocation10_spill]] %s3538_s0 }
   0x2   :  { %3564 = sst [smem:[#allocation11_spill]] %s3539_s1 }
   0x3   :  { %3565 = sst [smem:[#allocation12_spill]] %s3541_s3 }
   0x4   :  { %3566 = sst [smem:[#allocation13_spill]] %s3542_s4 }
   0x5   :  { %3567 = sst [smem:[#allocation14_spill]] %s3544_s6 }
   0x6   :  { %3568 = sst [smem:[#allocation15_spill]] %s3550_s12 }
   0x7   :  { %3569 = sst [smem:[#allocation16_spill]] %s3554_s16 }
   0x8   :  { %21 = vsyncpa [#allocation3], 0 }
   0x9   :  { %23 = vsyncpa [#allocation3 + $0x1], 0  ;;  %s3061_s21 = smov 0   ;;  %s3063_s22 = smov 0  }
   0xa   :  { %s3065_s23 = smov 0   ;;  %s3067_s24 = smov 0  }
   0xb LB: > { %3570 = sst [smem:[#allocation5_spill]] %s2959_s22  ;;  %s3080_s25 = sadd.s32 4294967295, %s2967_s24   ;;  %s2967_s24 = sphi %s3067_s24, %s3590_s24   ;;  %s2963_s23 = sphi %s3065_s23, %s3593_s23   ;;  %s2959_s22 = sphi %s3063_s22, %s3592_s22   ;;  %s2955_s21 = sphi %s3061_s21, %s3591_s21  }
   0xc   : > { %3571 = sst [smem:[#allocation6_spill]] %s2963_s23  ;;  %s3083_s26 = sadd.s32 1, %s2967_s24  }
   0xd   : > { %3572 = sst [smem:[#allocation7_spill]] %s3083_s26  ;;  %s325_s27 = ssub.s32 %s2967_s24, %s3083_s26 }
   0xe   : > { %s328_s28 = sadd.s32 1, %s2963_s23  ;;  %p326_p0 = scmp.eq.s32.totalorder %s325_s27, 0 }
   0xf   : > { %p335_p1 = scmp.ne.s32.totalorder %s2963_s23, %s2959_s22  ;;  %p336_p2 = scmp.eq.s32.totalorder %s2967_s24, 0 }
  0x10   : > { %p341_p3 = scmp.ne.s32.totalorder %s2959_s22, %s2955_s21  ;;  %p342_p5 = scmp.eq.s32.totalorder %s3080_s25, 0 }
  0x11   : > { %s3093_s29 = scalar_select %p326_p0, %s2963_s23, %s328_s28  }
  0x12   : > { %p337_p4 = por %p336_p2, %p335_p1  ;;  %p2702_p6 = scmp.lt.s32.totalorder %s2967_s24, 2 }
  0x13   : > { %3573 = sst [smem:[#allocation8_spill]] %s3093_s29  ;;  %p3097_p7 = por %p342_p5, %p341_p3 }
  0x14   : > { %s532_s0 = sand.u32 1, %s2963_s23   ;;  %s2539_s18 = sshll.u32 %s2967_s24, 11 }
  0x15   : > { %s2445_s17 = sshll.u32 %s532_s0, 7  ;;  %s3575_s12 = sld [smem:[#allocation15_spill]] }
  0x16   : > { %s536_s21 = scalar_lea.vmem [#allocation2], %s2445_s17  ;;  %p3110_p8 = pnand %p2702_p6, %p337_p4 }
  0x17   : > { %s543_s28 = sshll.u32 %s536_s21, 4  ;;  %s3115_s23 = scalar_lea.sflag [#allocation3], %s532_s0  ;;  %s3108_s28 = int_to_ptr.vmem [resolvable:$true] %s543_s28 }
  0x18   : > { %p2905_p11 = pneg %p3110_p8 }
  0x1b   : > { %s3106_s27 = scalar_lea.hbm %s3575_s12, %s2539_s18  ;;  %s2908_s20 = scalar_lea.hbm %s3575_s12, 4096 }
  0x1c   : > { %s2903_s19 = scalar_lea.hbm %s3106_s27, 2048  ;;  %p2909_p0 = scmp.lt.u32.totalorder %s3106_s27, %s3575_s12 }
  0x1d   : > { %p2904_p10 = scmp.ne.s32.totalorder %s3106_s27, %s2903_s19  ;;  %p2910_p1 = scmp.lt.u32.totalorder %s2908_s20, %s2903_s19 }
  0x1e   : > { %p2912_p3 = scmp.lt.u32.totalorder %s2903_s19, %s3106_s27 }
  0x1f   : > { %p2906_p12 = pnand %p2905_p11, %p2904_p10  ;;  %p2911_p2 = por %p2910_p1, %p2909_p0 }
  0x21   : > { %p2907_p13 = pneg %p2906_p12  ;;  %p2913_p4 = por %p2912_p3, %p2911_p2 }
  0x23   : > { %p2914_p5 = pnand %p2913_p4, %p2907_p13 }
  0x25   : > { %2917 = shalt.err (!%p2914_p5)
}
  0x26   : > { %s2918_s0 = scalar_lea.vmem %s3108_s28, 2048  ;;  %s2969_s17 = smov [#allocation2]  }
  0x27   : > { %p2919_p6 = scmp.ne.s32.totalorder %s3108_s28, %s2918_s0  ;;  %s2923_s18 = sshll.u32 %s2969_s17, 4  ;;  %s2924_s18 = int_to_ptr.vmem [resolvable:$false] %s2923_s18 }
  0x28   : > { %s2925_s26 = scalar_lea.vmem %s2924_s18, 4096  ;;  %p2926_p9 = scmp.lt.s32.totalorder %s3108_s28, %s2924_s18 }
  0x29   : > { %p2921_p10 = pnand %p2919_p6, %p2905_p11  ;;  %p2927_p0 = scmp.lt.s32.totalorder %s2925_s26, %s2918_s0 }
  0x2b   : > { %p2922_p12 = pneg %p2921_p10  ;;  %p2928_p1 = por %p2927_p0, %p2926_p9 }
  0x2d   : > { %p2929_p2 = pnand %p2928_p1, %p2922_p12 }
  0x2f   : > { %2932 = shalt.err (!%p2929_p2)
}
  0x30   : > { %s2970_s19 = smov 64   ;;  %s2971_s20 = smov 4  }
  0x31   : > { %2701 = dma.hbm_to_vmem [thread:$0]  (!%p3110_p8), %s3106_s27, 2048, %s3108_s28, %s3115_s23, %s2970_s19, %s2970_s19, %s2971_s20  }
  0x32   : > { %p569_p11 = scmp.lt.s32.totalorder %s2967_s24, 3  ;;  %p3577_p13 = scmp.ge.s32.totalorder %s2967_s24, 1 }
  0x34   : > { %p570_p3 = pnand %p3577_p13, %p569_p11 }
  0x36   : > { %573 = sbr.rel (%p570_p3) target bundleno = 2981 (0xba5), region = 84 }
  0x3d   : > { %s575_s21 = sand.u32 1, %s2959_s22  }
  0x3e   : > { %s2449_s0 = sshll.u32 %s575_s21, 7  ;;  %s576_s17 = scalar_lea.sflag [#allocation3], %s575_s21 }
  0x3f   : > { %s3147_s18 = scalar_lea.vmem [#allocation2], %s2449_s0 }
  0x40   : > { %3578 = sst [smem:[#allocation9_spill]] %s3147_s18 }
  0x41   : > { %2950 = dma.done.wait (%p3097_p7), %s576_s17, 2048  }
  0x42   : > { %2952 = vsyncadd (%p3097_p7), %s576_s17, 4294965248  ;;  %p664_p9 = scmp.lt.s32.totalorder %s3080_s25, 1  ;;  %s3579_s6 = sld [smem:[#allocation14_spill]] }
  0x43   : > { %s3580_s4 = sld [smem:[#allocation13_spill]]  ;;  %p2456_p7 = scmp.ne.s32.totalorder %s3080_s25, 0 }
  0x44   : > { %s3155_s23 = scalar_select %p664_p9, %s3080_s25, 1 }
  0x45   : > { %s3581_s12 = sld [smem:[#allocation10_spill]] (!%p2456_p7)  ;;  %v2457_v33 = vld [vmem:[%s3540_s2] ss:$0 sm:$0xff] (!%p2456_p7)  ;;  %s3582_s20 = sld [smem:[#allocation12_spill]] (!%p2456_p7) }
  0x46   : > { %s2694_s24 = smul.u32 192, %s3155_s23  ;;  %s2540_s29 = sshll.u32 %s3155_s23, 6 }
  0x47   : > { %s2695_s30 = smul.u32 3, %s3155_s23  ;;  %s2541_s19 = sshll.u32 %s3155_s23, 7 }
  0x48   : > { %s3163_s26 = scalar_lea.vmem %s3579_s6, %s2540_s29  ;;  %s2455_s0 = sshll.u32 %s3155_s23, 1 }
  0x49   : > { %s3168_s21 = scalar_lea.vmem %s3580_s4, %s2694_s24  ;;  %s3177_s1 = scalar_lea.vmem %s3543_s5, %s2695_s30 }
  0x4a   : > { %s3191_s4 = scalar_lea.vmem %s3548_s10, %s2541_s19  ;;  %s3197_s22 = scalar_lea.vmem %s3549_s11, %s2455_s0 }
  0x4b   : > { %s698_s3 = scalar_lea.vmem %s3551_s13, %s3155_s23  ;;  %s701_s29 = scalar_lea.vmem %s3552_s14, %s3155_s23  ;;  %v710_v0 = vld [vmem:[%s3581_s12] sm:$0xff] (!%p2456_p7)  ;;  %v712_v1 = vld [vmem:[%s3581_s12 + $0x10] sm:$0xff] (!%p2456_p7)  ;;  %v711_v2 = vld [vmem:[%s3581_s12 + $0x8] sm:$0xff] (!%p2456_p7) }
  0x4c   : > { %s704_s24 = scalar_lea.vmem %s3553_s15, %s3155_s23  ;;  %709 = sbr.rel (%p2456_p7) target bundleno = 396 (0x18c), region = 92  ;;  %716 = vadd.xlane.f32.xlu0 (!%p2456_p7), %v710_v0  ;;  %720 = vadd.xlane.f32.xlu1 (!%p2456_p7), %v712_v1  ;;  %v713_v3 = vld [vmem:[%s3581_s12 + $0x18] sm:$0xff] (!%p2456_p7)  ;;  %v2458_v35 = vld [vmem:[%s3582_s20] ss:$0 sm:$0xff] (!%p2456_p7) }
  0x4d   : > { %s3583_s18 = sld [smem:[#allocation16_spill]] (!%p2456_p7) }
  0x50   : > { %718 = vadd.xlane.f32.xlu0 (!%p2456_p7), %v711_v2  ;;  %722 = vadd.xlane.f32.xlu1 (!%p2456_p7), %v713_v3 }
  0xd9   : > { %v717_v4 = vpop.xlane.xlu0 %716  ;;  %v721_v5 = vpop.xlane.xlu1 %720 }
  0xda   : > { %v725_v6 = vmul.f32 0.0078125, %v717_v4  ;;  %v727_v7 = vmul.f32 0.0078125, %v721_v5 }
  0xdc   : > { %v729_v8 = vsub.f32 %v710_v0, %v725_v6  ;;  %v731_v9 = vsub.f32 %v712_v1, %v727_v7 }
  0xdd   : > { %v719_v10 = vpop.xlane.xlu0 %718  ;;  %v723_v11 = vpop.xlane.xlu1 %722 }
  0xde   : > { %v726_v12 = vmul.f32 0.0078125, %v719_v10  ;;  %v733_v13 = vmul.f32 %v729_v8, %v729_v8  ;;  %v728_v14 = vmul.f32 0.0078125, %v723_v11  ;;  %v735_v17 = vmul.f32 %v731_v9, %v731_v9 }
  0xe0   : > { %v730_v15 = vsub.f32 %v711_v2, %v726_v12  ;;  %737 = vadd.xlane.f32.xlu0 %v733_v13  ;;  %v732_v16 = vsub.f32 %v713_v3, %v728_v14 }
  0xe2   : > { %v734_v18 = vmul.f32 %v730_v15, %v730_v15  ;;  %v736_v19 = vmul.f32 %v732_v16, %v732_v16 }
  0xe4   : > { %741 = vadd.xlane.f32.xlu0 %v735_v17  ;;  %739 = vadd.xlane.f32.xlu1 %v734_v18 }
  0xe8   : > { %743 = vadd.xlane.f32.xlu1 %v736_v19 }
 0x16d   : > { %v738_v20 = vpop.xlane.xlu0 %737 }
 0x16e   : > { %v745_v21 = vmul.f32 0.0078125, %v738_v20 }
 0x170   : > { %v749_v22 = vadd.f32 1e-12, %v745_v21 }
 0x171   : > { %v740_v23 = vpop.xlane.xlu1 %739  ;;  %v742_v24 = vpop.xlane.xlu0 %741 }
 0x172   : > { %2741 = vrsqrt.f32 %v749_v22  ;;  %v746_v25 = vmul.f32 0.0078125, %v740_v23  ;;  %v747_v26 = vmul.f32 0.0078125, %v742_v24 }
 0x174   : > { %v750_v27 = vadd.f32 1e-12, %v746_v25  ;;  %v751_v28 = vadd.f32 1e-12, %v747_v26 }
 0x175   : > { %v744_v29 = vpop.xlane.xlu1 %743 }
 0x176   : > { %2743 = vrsqrt.f32 %v750_v27  ;;  %v748_v30 = vmul.f32 0.0078125, %v744_v29 }
 0x177   : > { %2745 = vrsqrt.f32 %v751_v28 }
 0x178   : > { %v752_v31 = vadd.f32 1e-12, %v748_v30 }
 0x17a   : > { %2747 = vrsqrt.f32 %v752_v31 }
 0x17c   : > { %v2742_v32 = vpop.eup %2741 }
 0x17d   : > { %v757_v34 = vmul.f32 %v2742_v32, %v729_v8 }
 0x17f   : > { %v767_v36 = vmul.f32 %v2457_v33, %v757_v34 }
 0x180   : > { %v2744_v37 = vpop.eup %2743 }
 0x181   : > { %v2746_v38 = vpop.eup %2745  ;;  %v777_v39 = vadd.f32 %v2458_v35, %v767_v36  ;;  %v758_v40 = vmul.f32 %v2744_v37, %v730_v15 }
 0x182   : > { %v759_v41 = vmul.f32 %v2746_v38, %v731_v9 }
 0x183   : > { %781 = vst [vmem:[%s3583_s18] sm:$0xff] %v777_v39  ;;  %v768_v42 = vmul.f32 %v2457_v33, %v758_v40 }
 0x184   : > { %v2748_v43 = vpop.eup %2747  ;;  %v769_v44 = vmul.f32 %v2457_v33, %v759_v41 }
 0x185   : > { %v778_v45 = vadd.f32 %v2458_v35, %v768_v42  ;;  %v760_v46 = vmul.f32 %v2748_v43, %v732_v16 }
 0x186   : > { %v779_v47 = vadd.f32 %v2458_v35, %v769_v44 }
 0x187   : > { %782 = vst [vmem:[%s3583_s18 + $0x8] sm:$0xff] %v778_v45  ;;  %v770_v48 = vmul.f32 %v2457_v33, %v760_v46 }
 0x188   : > { %783 = vst [vmem:[%s3583_s18 + $0x10] sm:$0xff] %v779_v47 }
 0x189   : > { %v780_v49 = vadd.f32 %v2458_v35, %v770_v48 }
 0x18b   : > { %784 = vst [vmem:[%s3583_s18 + $0x18] sm:$0xff] %v780_v49 }
 0x18c PF: > { %v2759_v50 = vld [vmem:[%s3168_s21 + $0x4] ss:$12 sps:$4 sm:$0xff]   ;;  %v2761_v51 = vld [vmem:[%s3168_s21] ss:$12 sps:$4 sm:$0xff]   ;;  %v2972_v52 = vmov 0   ;;  %s3584_s0 = sld [smem:[#allocation16_spill]]  ;;  %v825_v18 = vlaneseq  ;;  %s3586_s20 = scalar_lea.vmem %s3545_s7, %s3155_s23 }
 0x18d   : > { %1000 = vmatprep.mubr.bf16.mxu0 %v2972_v52  ;;  %968 = vmatprep.subr.bf16.mxu0 %v2759_v50  ;;  %v2762_v53 = vld [vmem:[%s3168_s21 + $0x1c] ss:$12 sps:$4 sm:$0xff]   ;;  %v2764_v54 = vld [vmem:[%s3168_s21 + $0x18] ss:$12 sps:$4 sm:$0xff]   ;;  %v2765_v55 = vld [vmem:[%s3168_s21 + $0x34] ss:$12 sps:$4 sm:$0xff]   ;;  %s3587_s18 = scalar_lea.vmem %s3546_s8, %s3155_s23  ;;  %s3588_s6 = scalar_lea.vmem %s3547_s9, %s3155_s23 }
 0x18e   : > { %969 = vmatpush1.bf16.msra.mxu0 %v2761_v51  ;;  %v2767_v56 = vld [vmem:[%s3168_s21 + $0x30] ss:$12 sps:$4 sm:$0xff]   ;;  %v2768_v57 = vld [vmem:[%s3168_s21 + $0x4c] ss:$12 sps:$4 sm:$0xff]   ;;  %v2770_v59 = vld [vmem:[%s3168_s21 + $0x48] ss:$12 sps:$4 sm:$0xff]  }
 0x18f   : > { %970 = vmatprep.subr.bf16.mxu0 %v2762_v53  ;;  %v2771_v61 = vld [vmem:[%s3168_s21 + $0x64] ss:$12 sps:$4 sm:$0xff]   ;;  %v2773_v63 = vld [vmem:[%s3168_s21 + $0x60] ss:$12 sps:$4 sm:$0xff]   ;;  %v2774_v0 = vld [vmem:[%s3168_s21 + $0x7c] ss:$12 sps:$4 sm:$0xff]  }
 0x190   : > { %v2776_v1 = vld [vmem:[%s3168_s21 + $0x78] ss:$12 sps:$4 sm:$0xff]   ;;  %v2777_v2 = vld [vmem:[%s3168_s21 + $0x94] ss:$12 sps:$4 sm:$0xff]   ;;  %v2779_v3 = vld [vmem:[%s3168_s21 + $0x90] ss:$12 sps:$4 sm:$0xff]  }
 0x191   : > { %v2780_v4 = vld [vmem:[%s3168_s21 + $0xac] ss:$12 sps:$4 sm:$0xff]   ;;  %v2782_v5 = vld [vmem:[%s3168_s21 + $0xa8] ss:$12 sps:$4 sm:$0xff]   ;;  %v2973_v9 = vmov 0.0   ;;  %vm2974_vm0 = vmmov 0  }
 0x192   : > { %971 = vmatpush1.bf16.msra.mxu0 %v2764_v54  ;;  %v3253_v58 = vld [vmem:[%s3584_s0] sm:$0xff]  ;;  %v3259_v60 = vld [vmem:[%s3584_s0 + $0x8] sm:$0xff]  ;;  %v3274_v6 = vld [vmem:[%s3584_s0 + $0x10] sm:$0xff]  ;;  %v826_v19 = vshrl.u32 %v825_v18, 7  ;;  %vm1073_vm1 = vcmask 523264   ;;  %s3585_s28 = sld [smem:[#allocation11_spill]] }
 0x193   : > { %972 = vmatprep.subr.bf16.mxu0 %v2765_v55  ;;  %v822_v62 = vpack.c.bf16 %v3259_v60, %v3253_v58  ;;  %v3279_v7 = vld [vmem:[%s3584_s0 + $0x18] sm:$0xff]  ;;  %v2783_v10 = vld [vmem:[%s3168_s21 + $0x8] ss:$12 sps:$4 sm:$0xff]   ;;  %v2784_v11 = vld [vmem:[%s3168_s21 + $0x20] ss:$12 sps:$4 sm:$0xff]   ;;  %vm1129_vm2 = vcmask 130048  }
 0x194   : > { %v823_v8 = vpack.c.bf16 %v3279_v7, %v3274_v6  ;;  %2606 = vmatprep.subr.bf16.mxu1 %v2783_v10  ;;  %v2785_v12 = vld [vmem:[%s3168_s21 + $0x38] ss:$12 sps:$4 sm:$0xff]   ;;  %v2786_v13 = vld [vmem:[%s3168_s21 + $0x50] ss:$12 sps:$4 sm:$0xff]   ;;  %v2787_v14 = vld [vmem:[%s3168_s21 + $0x68] ss:$12 sps:$4 sm:$0xff]  }
 0x195   : > { %2622 = vmatprep.mubr.bf16.mxu1 %v822_v62  ;;  %2607 = vmatpush3.bf16.msra.mxu1 %v2783_v10  ;;  %v2788_v15 = vld [vmem:[%s3168_s21 + $0x80] ss:$12 sps:$4 sm:$0xff]   ;;  %v2789_v16 = vld [vmem:[%s3168_s21 + $0x98] ss:$12 sps:$4 sm:$0xff]   ;;  %v2790_v17 = vld [vmem:[%s3168_s21 + $0xb0] ss:$12 sps:$4 sm:$0xff]  }
 0x196   : > { %973 = vmatpush1.bf16.msra.mxu0 %v2767_v56  ;;  %2608 = vmatprep.subr.bf16.mxu1 %v2784_v11  ;;  %v3298_v20 = vsub.s32 0, %v826_v19  ;;  %v821_v21 = vld [vmem:[%s3177_s1] sm:$0x7]  ;;  %v3301_v22 = vsub.s32 1, %v826_v19  ;;  %s2975_s21 = smov 64   ;;  %v835_v49 = vsub.s32 2, %v826_v19 }
 0x197   : > { %974 = vmatprep.subr.bf16.mxu0 %v2768_v57  ;;  %s3589_s25 = sld [smem:[#allocation9_spill]] }
 0x198   : > { %v828_v23 = vrot.slane %v821_v21, %v3298_v20  ;;  %v832_v25 = vrot.slane %v821_v21, %v3301_v22  ;;  %v836_v51 = vrot.slane %v821_v21, %v835_v49 }
 0x199   : > { %2609 = vmatpush3.bf16.msra.mxu1 %v2784_v11 }
 0x19a   : > { %975 = vmatpush1.bf16.msra.mxu0 %v2770_v59  ;;  %2610 = vmatprep.subr.bf16.mxu1 %v2785_v12 }
 0x19b   : > { %976 = vmatprep.subr.bf16.mxu0 %v2771_v61 }
 0x19d   : > { %2611 = vmatpush3.bf16.msra.mxu1 %v2785_v12 }
 0x19e   : > { %977 = vmatpush1.bf16.msra.mxu0 %v2773_v63  ;;  %2612 = vmatprep.subr.bf16.mxu1 %v2786_v13 }
 0x19f   : > { %978 = vmatprep.subr.bf16.mxu0 %v2774_v0 }
 0x1a1   : > { %2613 = vmatpush3.bf16.msra.mxu1 %v2786_v13 }
 0x1a2   : > { %979 = vmatpush1.bf16.msra.mxu0 %v2776_v1  ;;  %2614 = vmatprep.subr.bf16.mxu1 %v2787_v14 }
 0x1a3   : > { %980 = vmatprep.subr.bf16.mxu0 %v2777_v2 }
 0x1a5   : > { %2615 = vmatpush3.bf16.msra.mxu1 %v2787_v14 }
 0x1a6   : > { %981 = vmatpush1.bf16.msra.mxu0 %v2779_v3  ;;  %2616 = vmatprep.subr.bf16.mxu1 %v2788_v15 }
 0x1a7   : > { %982 = vmatprep.subr.bf16.mxu0 %v2780_v4  ;;  %v1070_v4 = vld [vmem:[%s3585_s28] sm:$0x3] }
 0x1a9   : > { %2617 = vmatpush3.bf16.msra.mxu1 %v2788_v15 }
 0x1aa   : > { %983 = vmatpush1.bf16.msra.mxu0 %v2782_v5  ;;  %2618 = vmatprep.subr.bf16.mxu1 %v2789_v16  ;;  %v1126_v5 = vrot.slane %v1070_v4, %v3298_v20 }
 0x1ab   : > { %2626 = vmatprep.subr.bf16.mxu0 %v2973_v9 }
 0x1ad   : > { %1001 = vmatmul.mubr.bf16.vlgmr.msra.gmra.mrb[0].mxu0 %v822_v62  ;;  %2619 = vmatpush3.bf16.msra.mxu1 %v2789_v16 }
 0x1ae   : > { %1010 = vmatprep.mubr.bf16.mxu0 %v2972_v52  ;;  %2620 = vmatprep.subr.bf16.mxu1 %v2790_v17 }
 0x1b1   : > { %2621 = vmatpush3.bf16.msra.mxu1 %v2790_v17 }
 0x1b2   : > { %2638 = vmatprep.subr.bf16.mxu1 %v2973_v9 }
 0x1b4   : > { %2623 = vmatmul.mubr.bf16.vlgmr.msra.gmra.mrb[0].mxu1 %v823_v8 }
 0x1b5   : > { %1011 = vmatmul.mubr.bf16.gmra.mrb[4].mxu0 %v823_v8  ;;  %2640 = vmatprep.mubr.msk.bf16.mxu1 %vm2974_vm0, %v2973_v9 }
 0x1b6   : > { %2628 = vmatprep.mubr.msk.bf16.mxu0 %vm2974_vm0, %v2973_v9 }
 0x280   : > { %v1002_v24 = vpop.f32.mrb[0].mxu0 }
 0x281   : > { %v1004_v26 = vpop.f32.mrb[1].mxu0  ;;  %v1003_v28 = vadd.f32 %v1002_v24, %v828_v23 }
 0x282   : > { %v1006_v27 = vpop.f32.mrb[2].mxu0  ;;  %v1005_v31 = vadd.f32 %v1004_v26, %v832_v25 }
 0x283   : > { %v1007_v29 = vadd.f32 %v1006_v27, %v828_v23  ;;  %v1008_v30 = vpop.f32.mrb[3].mxu0 }
 0x284   : > { %v1009_v32 = vadd.f32 %v1008_v30, %v832_v25  ;;  %v1390_v30 = vrot.slane %v1070_v4, %v3301_v22 }
 0x285   : > { %v1071_v33 = vpack.c.bf16 %v1007_v29, %v1003_v28 }
 0x286   : > { %v1072_v34 = vpack.c.bf16 %v1009_v32, %v1005_v31 }
 0x287   : > { %v2624_v53 = vpop.f32.mrb[0].mxu1 }
 0x288   : > { %1202 = vrot.lane.b32.xlu0 %v1072_v34, %s2975_s21  ;;  %v1012_v35 = vpop.f32.mrb[4].mxu0  ;;  %v1078_v36 = vsel %vm1073_vm1, %v1072_v34, 0  ;;  %v1064_v55 = vadd.f32 %v2624_v53, %v836_v51  ;;  %v1055_v56 = vpop.f32.mrb[1].mxu1 }
 0x289   : > { %v1013_v37 = vadd.f32 %v1012_v35, %v828_v23  ;;  %2627 = vmatpush3.bf16.xpose.msra.mxu0 %v1078_v36  ;;  %v1014_v38 = vpop.f32.mrb[5].mxu0  ;;  %v1056_v59 = vadd.f32 %v1055_v56, %v836_v51  ;;  %v2625_v61 = vpop.f32.mrb[2].mxu1 }
 0x28a   : > { %v1015_v39 = vadd.f32 %v1014_v38, %v832_v25  ;;  %v1016_v40 = vpop.f32.mrb[6].mxu0  ;;  %2632 = vmatprep.subr.bf16.mxu0 %v2973_v9  ;;  %v1067_v62 = vadd.f32 %v2625_v61, %v836_v51  ;;  %v1058_v63 = vpop.f32.mrb[3].mxu1 }
 0x28b   : > { %v1017_v41 = vadd.f32 %v1016_v40, %v828_v23  ;;  %v1018_v42 = vpop.f32.mrb[7].mxu0  ;;  %v1059_v0 = vadd.f32 %v1058_v63, %v836_v51 }
 0x28c   : > { %v1019_v43 = vadd.f32 %v1018_v42, %v832_v25  ;;  %1199 = vrot.lane.b32.xlu0 %v1071_v33, %s2975_s21  ;;  %v3325_v1 = vpack.c.bf16 %v1067_v62, %v1064_v55 }
 0x28d   : > { %v1336_v44 = vpack.c.bf16 %v1017_v41, %v1013_v37  ;;  %v3327_v2 = vpack.c.bf16 %v1059_v0, %v1056_v59 }
 0x28e   : > { %v1337_v45 = vpack.c.bf16 %v1019_v43, %v1015_v39 }
 0x290   : > { %2629 = vmatmul.mubr.msk.bf16.vlgmr.msra.gmra.mrb[8].mxu0 %vm1073_vm1, %v1071_v33  ;;  %1465 = vrot.lane.b32.xlu1 %v1337_v45, %s2975_s21  ;;  %v1342_v50 = vsel %vm1073_vm1, %v1337_v45, 0 }
 0x291   : > { %2634 = vmatprep.mubr.msk.bf16.mxu0 %vm2974_vm0, %v2973_v9  ;;  %2633 = vmatpush3.bf16.msra.mxu0 %v3327_v2 }
 0x292   : > { %2644 = vmatprep.subr.bf16.mxu0 %v2973_v9 }
 0x294   : > { %1462 = vrot.lane.b32.xlu1 %v1336_v44, %s2975_s21 }
 0x2fa   : > { %v1203_v46 = vpop.permute.xlu0 %1202 }
 0x2fb   : > { %v1208_v47 = vsel %vm1073_vm1, %v1203_v46, 0 }
 0x2fc   : > { %2639 = vmatpush3.bf16.xpose.msra.mxu1 %v1208_v47 }
 0x2fd   : > { %2650 = vmatprep.subr.bf16.mxu1 %v2973_v9 }
 0x2fe   : > { %v1200_v48 = vpop.permute.xlu0 %1199 }
 0x302   : > { %v1466_v54 = vpop.permute.xlu1 %1465 }
 0x303   : > { %2641 = vmatmul.mubr.msk.bf16.vlgmr.msra.gmra.mrb[4].mxu1 %vm1073_vm1, %v1200_v48  ;;  %v1471_v57 = vsel %vm1073_vm1, %v1466_v54, 0 }
 0x304   : > { %2651 = vmatpush3.bf16.xpose.msra.mxu1 %v1342_v50  ;;  %2652 = vmatprep.mubr.msk.bf16.mxu1 %vm2974_vm0, %v2973_v9 }
 0x305   : > { %2662 = vmatprep.subr.bf16.mxu1 %v2973_v9 }
 0x306   : > { %v1463_v3 = vpop.permute.xlu1 %1462 }
 0x30b   : > { %2653 = vmatmul.mubr.msk.bf16.vlgmr.msra.gmra.mrb[8].mxu1 %vm1073_vm1, %v1336_v44 }
 0x30c   : > { %2663 = vmatpush3.bf16.xpose.msra.mxu1 %v1471_v57  ;;  %2664 = vmatprep.mubr.msk.bf16.mxu1 %vm2974_vm0, %v2973_v9 }
 0x313   : > { %2665 = vmatmul.mubr.msk.bf16.vlgmr.msra.gmra.mrb[12].mxu1 %vm1073_vm1, %v1463_v3 }
 0x363   : > { %v1114_v8 = vpop.f32.mrb[8].mxu0 }
 0x364   : > { %v1121_v10 = vmul.f32 0.125, %v1114_v8  ;;  %v2630_v11 = vpop.f32.mrb[9].mxu0 }
 0x365   : > { %v1117_v12 = vpop.f32.mrb[10].mxu0 }
 0x366   : > { %v1122_v13 = vmul.f32 0.125, %v1117_v12  ;;  %v2631_v14 = vpop.f32.mrb[11].mxu0  ;;  %v1127_v15 = vadd.f32 %v1126_v5, %v1121_v10 }
 0x368   : > { %v1130_v16 = vsel %vm1129_vm2, %v1127_v15, -inf  ;;  %v1128_v17 = vadd.f32 %v1126_v5, %v1122_v13 }
 0x369   : > { %1131 = vmax.xlane.f32.xlu0 %v1130_v16 }
 0x36a   : > { %v1133_v18 = vsel %vm1129_vm2, %v1128_v17, -inf }
 0x36b   : > { %1134 = vmax.xlane.f32.xlu1 %v1133_v18 }
 0x3d6   : > { %v1244_v19 = vpop.f32.mrb[4].mxu1 }
 0x3d7   : > { %v1251_v21 = vmul.f32 0.125, %v1244_v19  ;;  %v2642_v23 = vpop.f32.mrb[5].mxu1 }
 0x3d8   : > { %v1247_v24 = vpop.f32.mrb[6].mxu1 }
 0x3d9   : > { %v1252_v25 = vmul.f32 0.125, %v1247_v24  ;;  %v2643_v26 = vpop.f32.mrb[7].mxu1  ;;  %v1253_v27 = vadd.f32 %v1251_v21, %v1126_v5 }
 0x3db   : > { %v1255_v28 = vsel %vm1129_vm2, %v1253_v27, -inf  ;;  %v1254_v29 = vadd.f32 %v1252_v25, %v1126_v5 }
 0x3dc   : > { %1256 = vmax.xlane.f32.xlu0 %v1255_v28 }
 0x3dd   : > { %v1258_v34 = vsel %vm1129_vm2, %v1254_v29, -inf }
 0x3de   : > { %v1378_v31 = vpop.f32.mrb[8].mxu1 }
 0x3df   : > { %v1385_v32 = vmul.f32 0.125, %v1378_v31  ;;  %v2654_v33 = vpop.f32.mrb[9].mxu1 }
 0x3e0   : > { %v1381_v35 = vpop.f32.mrb[10].mxu1  ;;  %1259 = vmax.xlane.f32.xlu0 %v1258_v34 }
 0x3e1   : > { %v1386_v36 = vmul.f32 0.125, %v1381_v35  ;;  %v2655_v37 = vpop.f32.mrb[11].mxu1  ;;  %v1391_v38 = vadd.f32 %v1390_v30, %v1385_v32 }
 0x3e3   : > { %v1393_v39 = vsel %vm1129_vm2, %v1391_v38, -inf  ;;  %v1392_v40 = vadd.f32 %v1390_v30, %v1386_v36 }
 0x3e4   : > { %1394 = vmax.xlane.f32.xlu1 %v1393_v39 }
 0x3e5   : > { %v1396_v41 = vsel %vm1129_vm2, %v1392_v40, -inf }
 0x3e6   : > { %v1507_v42 = vpop.f32.mrb[12].mxu1  ;;  %1397 = vmax.xlane.f32.xlu0 %v1396_v41 }
 0x3e7   : > { %v1514_v43 = vmul.f32 0.125, %v1507_v42  ;;  %v2666_v44 = vpop.f32.mrb[13].mxu1 }
 0x3e8   : > { %v1510_v45 = vpop.f32.mrb[14].mxu1 }
 0x3e9   : > { %v1515_v46 = vmul.f32 0.125, %v1510_v45  ;;  %v2667_v47 = vpop.f32.mrb[15].mxu1  ;;  %v1516_v48 = vadd.f32 %v1514_v43, %v1390_v30 }
 0x3eb   : > { %v1518_v49 = vsel %vm1129_vm2, %v1516_v48, -inf  ;;  %v1517_v50 = vadd.f32 %v1515_v46, %v1390_v30 }
 0x3ec   : > { %1519 = vmax.xlane.f32.xlu1 %v1518_v49 }
 0x3ed   : > { %v1521_v51 = vsel %vm1129_vm2, %v1517_v50, -inf }
 0x3ee   : > { %1522 = vmax.xlane.f32.xlu0 %v1521_v51 }
 0x3f6   : > { %v1132_v53 = vpop.xlane.xlu0 %1131 }
 0x3f7   : > { %v1136_v54 = vsub.f32 %v1127_v15, %v1132_v53 }
 0x3f8   : > { %v1135_v55 = vpop.xlane.xlu1 %1134 }
 0x3f9   : > { %v1138_v56 = vmul.f32 1.442695, %v1136_v54  ;;  %v1137_v57 = vsub.f32 %v1128_v17, %v1135_v55 }
 0x3fb   : > { %2839 = vpow2.f32 %v1138_v56  ;;  %v1140_v59 = vmul.f32 1.442695, %v1137_v57 }
 0x3fd   : > { %2841 = vpow2.f32 %v1140_v59 }
 0x405   : > { %v2840_v61 = vpop.eup %2839 }
 0x406   : > { %v1142_v62 = vsel %vm1129_vm2, %v2840_v61, 0.0 }
 0x407   : > { %v2842_v63 = vpop.eup %2841  ;;  %1143 = vadd.xlane.f32.xlu1 %v1142_v62 }
 0x408   : > { %v1145_v0 = vsel %vm1129_vm2, %v2842_v63, 0.0 }
 0x409   : > { %1146 = vadd.xlane.f32.xlu0 %v1145_v0 }
 0x469   : > { %v1257_v3 = vpop.xlane.xlu0 %1256 }
 0x46a   : > { %v1261_v4 = vsub.f32 %v1253_v27, %v1257_v3 }
 0x46c   : > { %v1263_v5 = vmul.f32 1.442695, %v1261_v4 }
 0x46d   : > { %v1260_v8 = vpop.xlane.xlu0 %1259 }
 0x46e   : > { %2843 = vpow2.f32 %v1263_v5  ;;  %v1262_v10 = vsub.f32 %v1254_v29, %v1260_v8 }
 0x470   : > { %v1265_v11 = vmul.f32 1.442695, %v1262_v10 }
 0x471   : > { %v1395_v12 = vpop.xlane.xlu1 %1394 }
 0x472   : > { %2845 = vpow2.f32 %v1265_v11  ;;  %v1399_v13 = vsub.f32 %v1391_v38, %v1395_v12 }
 0x473   : > { %v1398_v14 = vpop.xlane.xlu0 %1397 }
 0x474   : > { %v1401_v15 = vmul.f32 1.442695, %v1399_v13  ;;  %v1400_v16 = vsub.f32 %v1392_v40, %v1398_v14  ;;  %v2791_v14 = vld [vmem:[%s3163_s26] sm:$0xff]  }
 0x475   : > { %2674 = vmatprep.subr.bf16.mxu1 %v2791_v14 }
 0x476   : > { %2847 = vpow2.f32 %v1401_v15  ;;  %v1403_v17 = vmul.f32 1.442695, %v1400_v16  ;;  %v2792_v15 = vld [vmem:[%s3163_s26 + $0x8] sm:$0xff]   ;;  %2675 = vmatpush3.bf16.msra.mxu1 %v2791_v14  ;;  %v2794_v16 = vld [vmem:[%s3163_s26 + $0x18] sm:$0xff]  }
 0x477   : > { %2676 = vmatprep.subr.bf16.mxu1 %v2792_v15 }
 0x478   : > { %v2844_v18 = vpop.eup %2843  ;;  %2849 = vpow2.f32 %v1403_v17  ;;  %v2795_v17 = vld [vmem:[%s3163_s26 + $0x20] sm:$0xff]  }
 0x479   : > { %v1520_v19 = vpop.xlane.xlu1 %1519  ;;  %v1267_v21 = vsel %vm1129_vm2, %v2844_v18, 0.0 }
 0x47a   : > { %v1524_v23 = vsub.f32 %v1516_v48, %v1520_v19  ;;  %1268 = vadd.xlane.f32.xlu1 %v1267_v21  ;;  %2677 = vmatpush3.bf16.msra.mxu1 %v2792_v15  ;;  %v2797_v21 = vld [vmem:[%s3163_s26 + $0x30] sm:$0xff]  }
 0x47b   : > { %v1523_v24 = vpop.xlane.xlu0 %1522 }
 0x47c   : > { %v2846_v25 = vpop.eup %2845  ;;  %v1526_v26 = vmul.f32 1.442695, %v1524_v23  ;;  %v1525_v27 = vsub.f32 %v1517_v50, %v1523_v24 }
 0x47d   : > { %v1270_v28 = vsel %vm1129_vm2, %v2846_v25, 0.0 }
 0x47e   : > { %2851 = vpow2.f32 %v1526_v26  ;;  %v1528_v29 = vmul.f32 1.442695, %v1525_v27  ;;  %1271 = vadd.xlane.f32.xlu0 %v1270_v28  ;;  %v2798_v28 = vld [vmem:[%s3163_s26 + $0x38] sm:$0xff]  }
 0x480   : > { %v2848_v30 = vpop.eup %2847  ;;  %2853 = vpow2.f32 %v1528_v29 }
 0x481   : > { %v1405_v31 = vsel %vm1129_vm2, %v2848_v30, 0.0 }
 0x482   : > { %v2850_v32 = vpop.eup %2849  ;;  %1406 = vadd.xlane.f32.xlu1 %v1405_v31 }
 0x483   : > { %v1408_v33 = vsel %vm1129_vm2, %v2850_v32, 0.0 }
 0x484   : > { %1409 = vadd.xlane.f32.xlu0 %v1408_v33 }
 0x488   : > { %v2852_v34 = vpop.eup %2851 }
 0x489   : > { %v1530_v35 = vsel %vm1129_vm2, %v2852_v34, 0.0 }
 0x48a   : > { %v2854_v36 = vpop.eup %2853  ;;  %1531 = vadd.xlane.f32.xlu1 %v1530_v35 }
 0x48b   : > { %v1533_v37 = vsel %vm1129_vm2, %v2854_v36, 0.0 }
 0x48c   : > { %1534 = vadd.xlane.f32.xlu0 %v1533_v37 }
 0x494   : > { %v1144_v38 = vpop.xlane.xlu1 %1143 }
 0x495   : > { %2855 = vrcp.f32 %v1144_v38 }
 0x496   : > { %v1147_v39 = vpop.xlane.xlu0 %1146 }
 0x497   : > { %2857 = vrcp.f32 %v1147_v39 }
 0x49b   : > { %1279 = vrot.lane.b32.xlu1 %v3327_v2, %s2975_s21 }
 0x49f   : > { %v2856_v40 = vpop.eup %2855 }
 0x4a0   : > { %v1150_v42 = vmul.f32 %v2856_v40, %v2840_v61 }
 0x4a1   : > { %v2858_v41 = vpop.eup %2857 }
 0x4a2   : > { %v1151_v43 = vmul.f32 %v2858_v41, %v2842_v63  ;;  %1542 = vrot.lane.b32.xlu0 %v3325_v1, %s2975_s21 }
 0x4a4   : > { %v1152_v44 = vpack.c.bf16 %v1151_v43, %v1150_v42 }
 0x4a6   : > { %2635 = vmatmul.mubr.msk.bf16.vlgmr.msra.gmra.mrb[12].mxu0 %vm1129_vm2, %v1152_v44 }
 0x4a7   : > { %2646 = vmatprep.mubr.msk.bf16.mxu0 %vm2974_vm0, %v2973_v9 }
 0x507   : > { %v1269_v45 = vpop.xlane.xlu1 %1268 }
 0x50b   : > { %v1272_v46 = vpop.xlane.xlu0 %1271 }
 0x50c   : > { %2859 = vrcp.f32 %v1272_v46 }
 0x50d   : > { %2861 = vrcp.f32 %v1269_v45 }
 0x50f   : > { %v1407_v48 = vpop.xlane.xlu1 %1406 }
 0x511   : > { %v1410_v47 = vpop.xlane.xlu0 %1409 }
 0x512   : > { %2863 = vrcp.f32 %v1410_v47 }
 0x513   : > { %2865 = vrcp.f32 %v1407_v48 }
 0x516   : > { %v2860_v2 = vpop.eup %2859 }
 0x517   : > { %v1532_v49 = vpop.xlane.xlu1 %1531  ;;  %v2862_v50 = vpop.eup %2861  ;;  %v1276_v51 = vmul.f32 %v2860_v2, %v2846_v25  ;;  %v2491_v2 = vld [vmem:[%s3586_s20] ss:$0 sm:$0xff] }
 0x518   : > { %v1275_v54 = vmul.f32 %v2862_v50, %v2844_v18  ;;  %v2796_v18 = vld [vmem:[%s3163_s26 + $0x28] sm:$0xff]  }
 0x519   : > { %v1535_v53 = vpop.xlane.xlu0 %1534 }
 0x51a   : > { %2867 = vrcp.f32 %v1535_v53  ;;  %v1277_v56 = vpack.c.bf16 %v1276_v51, %v1275_v54 }
 0x51b   : > { %v1280_v55 = vpop.permute.xlu1 %1279  ;;  %2869 = vrcp.f32 %v1532_v49 }
 0x51c   : > { %2645 = vmatpush3.bf16.msra.mxu0 %v1280_v55  ;;  %v2864_v57 = vpop.eup %2863 }
 0x51d   : > { %2656 = vmatprep.subr.bf16.mxu0 %v2973_v9  ;;  %v2866_v59 = vpop.eup %2865  ;;  %v1414_v61 = vmul.f32 %v2864_v57, %v2850_v32  ;;  %v1543_v3 = vpop.permute.xlu0 %1542 }
 0x51e   : > { %v1413_v62 = vmul.f32 %v2866_v59, %v2848_v30 }
 0x51f   : > { %2647 = vmatmul.mubr.msk.bf16.vlgmr.msra.gmra.mrb[16].mxu0 %vm1129_vm2, %v1277_v56 }
 0x520   : > { %2657 = vmatpush3.bf16.msra.mxu0 %v3325_v1  ;;  %2658 = vmatprep.mubr.msk.bf16.mxu0 %vm2974_vm0, %v2973_v9  ;;  %v1415_v63 = vpack.c.bf16 %v1414_v61, %v1413_v62 }
 0x521   : > { %2668 = vmatprep.subr.bf16.mxu0 %v2973_v9 }
 0x524   : > { %v2868_v0 = vpop.eup %2867 }
 0x525   : > { %v2870_v4 = vpop.eup %2869  ;;  %v1539_v1 = vmul.f32 %v2868_v0, %v2854_v36  ;;  %v2799_v0 = vld [vmem:[%s3191_s4] ss:$8 sps:$4 sm:$0xff]  }
 0x526   : > { %v1538_v5 = vmul.f32 %v2870_v4, %v2852_v34  ;;  %v2804_v4 = vld [vmem:[%s3191_s4 + $0x14] ss:$8 sps:$4 sm:$0xff]  }
 0x527   : > { %2659 = vmatmul.mubr.msk.bf16.vlgmr.msra.gmra.mrb[20].mxu0 %vm1129_vm2, %v1415_v63 }
 0x528   : > { %2669 = vmatpush3.bf16.msra.mxu0 %v1543_v3  ;;  %2670 = vmatprep.mubr.msk.bf16.mxu0 %vm2974_vm0, %v2973_v9  ;;  %v1540_v8 = vpack.c.bf16 %v1539_v1, %v1538_v5  ;;  %v2793_v9 = vld [vmem:[%s3163_s26 + $0x10] sm:$0xff]   ;;  %v2801_v3 = vld [vmem:[%s3191_s4 + $0x4] ss:$8 sps:$4 sm:$0xff]  }
 0x529   : > { %2678 = vmatprep.subr.bf16.mxu1 %v2793_v9  ;;  %1902 = vmatprep.subr.bf16.mxu0 %v2801_v3  ;;  %v2802_v1 = vld [vmem:[%s3191_s4 + $0x10] ss:$8 sps:$4 sm:$0xff]  }
 0x52a   : > { %2679 = vmatpush3.bf16.msra.mxu1 %v2793_v9 }
 0x52b   : > { %2680 = vmatprep.subr.bf16.mxu1 %v2794_v16 }
 0x52e   : > { %2681 = vmatpush3.bf16.msra.mxu1 %v2794_v16 }
 0x52f   : > { %2671 = vmatmul.mubr.msk.bf16.vlgmr.msra.gmra.mrb[24].mxu0 %vm1129_vm2, %v1540_v8  ;;  %2682 = vmatprep.subr.bf16.mxu1 %v2795_v17 }
 0x530   : > { %1934 = vmatprep.mubr.bf16.mxu0 %v2972_v52  ;;  %1903 = vmatpush1.bf16.msra.mxu0 %v2799_v0 }
 0x531   : > { %1904 = vmatprep.subr.bf16.mxu0 %v2804_v4 }
 0x532   : > { %2683 = vmatpush3.bf16.msra.mxu1 %v2795_v17 }
 0x533   : > { %2684 = vmatprep.subr.bf16.mxu1 %v2796_v18 }
 0x534   : > { %1905 = vmatpush1.bf16.msra.mxu0 %v2802_v1  ;;  %v2823_v1 = vld [vmem:[%s3589_s25 + $0x40] sm:$0xff]  }
 0x536   : > { %2685 = vmatpush3.bf16.msra.mxu1 %v2796_v18 }
 0x537   : > { %2686 = vmatprep.subr.bf16.mxu1 %v2797_v21 }
 0x53a   : > { %2687 = vmatpush3.bf16.msra.mxu1 %v2797_v21  ;;  %v2805_v21 = vld [vmem:[%s3191_s4 + $0x20] ss:$8 sps:$4 sm:$0xff]  }
 0x53b   : > { %2688 = vmatprep.subr.bf16.mxu1 %v2798_v28 }
 0x53e   : > { %2689 = vmatpush3.bf16.msra.mxu1 %v2798_v28  ;;  %v2814_v28 = vld [vmem:[%s3191_s4 + $0x50] ss:$8 sps:$4 sm:$0xff]  }
 0x53f   : > { %2578 = vmatprep.subr.bf16.mxu1 %v2823_v1 }
 0x579   : > { %v1191_v10 = vpop.f32.mrb[12].mxu0 }
 0x57a   : > { %v2636_v11 = vpop.f32.mrb[13].mxu0 }
 0x57b   : > { %v1194_v12 = vpop.f32.mrb[14].mxu0 }
 0x57c   : > { %v2637_v13 = vpop.f32.mrb[15].mxu0 }
 0x5f2   : > { %v1319_v19 = vpop.f32.mrb[16].mxu0 }
 0x5f3   : > { %v2648_v23 = vpop.f32.mrb[17].mxu0 }
 0x5f4   : > { %v1322_v24 = vpop.f32.mrb[18].mxu0  ;;  %v2810_v23 = vld [vmem:[%s3191_s4 + $0x34] ss:$8 sps:$4 sm:$0xff]  }
 0x5f5   : > { %v2749_v25 = vpack.i.bf16 %v1322_v24, %v1319_v19  ;;  %v2649_v26 = vpop.f32.mrb[19].mxu0  ;;  %v2807_v19 = vld [vmem:[%s3191_s4 + $0x24] ss:$8 sps:$4 sm:$0xff]   ;;  %v2808_v24 = vld [vmem:[%s3191_s4 + $0x30] ss:$8 sps:$4 sm:$0xff]  }
 0x5f6   : > { %1906 = vmatprep.subr.bf16.mxu0 %v2807_v19  ;;  %v2811_v26 = vld [vmem:[%s3191_s4 + $0x40] ss:$8 sps:$4 sm:$0xff]  }
 0x5f7   : > { %2750 = vrot.lane.b32.xlu1 %v2749_v25, %s2975_s21  ;;  %1907 = vmatpush1.bf16.msra.mxu0 %v2805_v21  ;;  %v2813_v25 = vld [vmem:[%s3191_s4 + $0x44] ss:$8 sps:$4 sm:$0xff]  }
 0x5f8   : > { %1908 = vmatprep.subr.bf16.mxu0 %v2810_v23 }
 0x5fa   : > { %v1454_v27 = vpop.f32.mrb[20].mxu0 }
 0x5fb   : > { %v2660_v29 = vpop.f32.mrb[21].mxu0  ;;  %1909 = vmatpush1.bf16.msra.mxu0 %v2808_v24 }
 0x5fc   : > { %v1457_v30 = vpop.f32.mrb[22].mxu0  ;;  %1910 = vmatprep.subr.bf16.mxu0 %v2813_v25  ;;  %v2819_v29 = vld [vmem:[%s3191_s4 + $0x64] ss:$8 sps:$4 sm:$0xff]  }
 0x5fd   : > { %v2661_v31 = vpop.f32.mrb[23].mxu0 }
 0x5fe   : > { %v2822_v31 = vld [vmem:[%s3191_s4 + $0x74] ss:$8 sps:$4 sm:$0xff]  }
 0x5ff   : > { %1911 = vmatpush1.bf16.msra.mxu0 %v2811_v26 }
 0x602   : > { %v1582_v32 = vpop.f32.mrb[24].mxu0 }
 0x603   : > { %v2672_v33 = vpop.f32.mrb[25].mxu0 }
 0x604   : > { %v1585_v34 = vpop.f32.mrb[26].mxu0 }
 0x605   : > { %v2754_v35 = vpack.i.bf16 %v1585_v34, %v1582_v32  ;;  %v2673_v36 = vpop.f32.mrb[27].mxu0  ;;  %v2820_v32 = vld [vmem:[%s3191_s4 + $0x70] ss:$8 sps:$4 sm:$0xff]  }
 0x607   : > { %2755 = vrot.lane.b32.xlu1 %v2754_v35, %s2975_s21 }
 0x669   : > { %v2751_v37 = vpop.permute.xlu1 %2750 }
 0x66a   : > { %v2753_v38 = vunpack.i.h.bf16 %v2751_v37  ;;  %v2752_v39 = vunpack.i.l.bf16 %v2751_v37 }
 0x66c   : > { %v1334_v40 = vsel %vm1073_vm1, %v1191_v10, %v2752_v39  ;;  %v1335_v41 = vsel %vm1073_vm1, %v1194_v12, %v2753_v38 }
 0x66d   : > { %v1616_v42 = vpack.c.bf16 %v1335_v41, %v1334_v40 }
 0x66f   : > { %2690 = vmatprep.mubr.bf16.mxu1 %v1616_v42 }
 0x679   : > { %v2756_v43 = vpop.permute.xlu1 %2755 }
 0x67a   : > { %v2758_v44 = vunpack.i.h.bf16 %v2756_v43  ;;  %v2757_v45 = vunpack.i.l.bf16 %v2756_v43 }
 0x67c   : > { %v1598_v46 = vsel %vm1073_vm1, %v1457_v30, %v2758_v44  ;;  %v1597_v47 = vsel %vm1073_vm1, %v1454_v27, %v2757_v45  ;;  %v2816_v27 = vld [vmem:[%s3191_s4 + $0x54] ss:$8 sps:$4 sm:$0xff]   ;;  %v2817_v30 = vld [vmem:[%s3191_s4 + $0x60] ss:$8 sps:$4 sm:$0xff]  }
 0x67d   : > { %v1617_v48 = vpack.c.bf16 %v1598_v46, %v1597_v47  ;;  %1912 = vmatprep.subr.bf16.mxu0 %v2816_v27  ;;  %v2500_v46 = vld [vmem:[%s3587_s18] ss:$0 sm:$0xff] }
 0x67e   : > { %1913 = vmatpush1.bf16.msra.mxu0 %v2814_v28 }
 0x67f   : > { %2691 = vmatmul.mubr.bf16.vlgmr.msra.gmra.mrb[16].mxu1 %v1617_v48  ;;  %1914 = vmatprep.subr.bf16.mxu0 %v2819_v29 }
 0x682   : > { %1915 = vmatpush1.bf16.msra.mxu0 %v2817_v30 }
 0x683   : > { %1916 = vmatprep.subr.bf16.mxu0 %v2822_v31 }
 0x686   : > { %1917 = vmatpush1.bf16.msra.mxu0 %v2820_v32 }
 0x752   : > { %v2692_v49 = vpop.f32.mrb[16].mxu1 }
 0x753   : > { %v1706_v50 = vpop.f32.mrb[17].mxu1  ;;  %v1715_v55 = vadd.f32 %v2692_v49, %v2491_v2 }
 0x754   : > { %v1707_v51 = vadd.f32 %v2491_v2, %v1706_v50  ;;  %v2693_v53 = vpop.f32.mrb[18].mxu1 }
 0x755   : > { %v1709_v54 = vpop.f32.mrb[19].mxu1  ;;  %v1718_v61 = vadd.f32 %v2693_v53, %v2491_v2  ;;  %v1723_v62 = vadd.f32 %v1715_v55, %v3274_v6 }
 0x756   : > { %v1710_v56 = vadd.f32 %v2491_v2, %v1709_v54  ;;  %v1721_v57 = vadd.f32 %v1707_v51, %v3253_v58  ;;  %v2501_v51 = vld [vmem:[%s3588_s6] ss:$0 sm:$0xff] }
 0x757   : > { %v1724_v63 = vadd.f32 %v1718_v61, %v3279_v7 }
 0x758   : > { %1727 = vadd.xlane.f32.xlu0 %v1721_v57  ;;  %v1722_v59 = vadd.f32 %v1710_v56, %v3259_v60 }
 0x75a   : > { %1729 = vadd.xlane.f32.xlu1 %v1722_v59 }
 0x75c   : > { %1731 = vadd.xlane.f32.xlu0 %v1723_v62 }
 0x760   : > { %1733 = vadd.xlane.f32.xlu0 %v1724_v63 }
 0x7e5   : > { %v1728_v58 = vpop.xlane.xlu0 %1727 }
 0x7e6   : > { %v1736_v5 = vmul.f32 0.0078125, %v1728_v58  ;;  %v2824_v58 = vld [vmem:[%s3589_s25] sm:$0xff]  }
 0x7e7   : > { %v1730_v8 = vpop.xlane.xlu1 %1729  ;;  %2579 = vmatpush3.bf16.msra.mxu1 %v2824_v58 }
 0x7e8   : > { %v1740_v60 = vsub.f32 %v1721_v57, %v1736_v5  ;;  %v1737_v10 = vmul.f32 0.0078125, %v1730_v8  ;;  %v2825_v5 = vld [vmem:[%s3589_s25 + $0x48] sm:$0xff]  }
 0x7e9   : > { %v1732_v11 = vpop.xlane.xlu0 %1731  ;;  %v2826_v8 = vld [vmem:[%s3589_s25 + $0x8] sm:$0xff]   ;;  %2580 = vmatprep.subr.bf16.mxu1 %v2825_v5 }
 0x7ea   : > { %v1741_v6 = vsub.f32 %v1722_v59, %v1737_v10  ;;  %v1738_v12 = vmul.f32 0.0078125, %v1732_v11  ;;  %v1744_v7 = vmul.f32 %v1740_v60, %v1740_v60  ;;  %v2829_v10 = vld [vmem:[%s3589_s25 + $0x58] sm:$0xff]  }
 0x7eb   : > { %2581 = vmatpush3.bf16.msra.mxu1 %v2826_v8  ;;  %v2830_v11 = vld [vmem:[%s3589_s25 + $0x18] sm:$0xff]  }
 0x7ec   : > { %v1742_v13 = vsub.f32 %v1723_v62, %v1738_v12  ;;  %1748 = vadd.xlane.f32.xlu1 %v1744_v7  ;;  %v1745_v14 = vmul.f32 %v1741_v6, %v1741_v6  ;;  %v2832_v12 = vld [vmem:[%s3589_s25 + $0x20] sm:$0xff]   ;;  %v2833_v7 = vld [vmem:[%s3589_s25 + $0x68] sm:$0xff]  }
 0x7ed   : > { %v1734_v15 = vpop.xlane.xlu0 %1733 }
 0x7ee   : > { %v1739_v9 = vmul.f32 0.0078125, %v1734_v15  ;;  %1750 = vadd.xlane.f32.xlu0 %v1745_v14  ;;  %v1746_v16 = vmul.f32 %v1742_v13, %v1742_v13  ;;  %v2835_v14 = vld [vmem:[%s3589_s25 + $0x70] sm:$0xff]  }
 0x7ef   : > { %v2836_v15 = vld [vmem:[%s3589_s25 + $0x30] sm:$0xff]  }
 0x7f0   : > { %v1743_v17 = vsub.f32 %v1724_v63, %v1739_v9  ;;  %1752 = vadd.xlane.f32.xlu1 %v1746_v16  ;;  %v2837_v9 = vld [vmem:[%s3589_s25 + $0x78] sm:$0xff]  }
 0x7f1   : > { %v2838_v16 = vld [vmem:[%s3589_s25 + $0x38] sm:$0xff]  }
 0x7f2   : > { %v1747_v18 = vmul.f32 %v1743_v17, %v1743_v17 }
 0x7f4   : > { %1754 = vadd.xlane.f32.xlu0 %v1747_v18 }
 0x879   : > { %v1749_v33 = vpop.xlane.xlu1 %1748 }
 0x87a   : > { %v1756_v34 = vmul.f32 0.0078125, %v1749_v33 }
 0x87b   : > { %v1751_v35 = vpop.xlane.xlu0 %1750 }
 0x87c   : > { %v1760_v36 = vadd.f32 1e-12, %v1756_v34  ;;  %v1757_v37 = vmul.f32 0.0078125, %v1751_v35 }
 0x87d   : > { %v1753_v38 = vpop.xlane.xlu1 %1752 }
 0x87e   : > { %2871 = vrsqrt.f32 %v1760_v36  ;;  %v1761_v39 = vadd.f32 1e-12, %v1757_v37  ;;  %v1758_v40 = vmul.f32 0.0078125, %v1753_v38 }
 0x880   : > { %2873 = vrsqrt.f32 %v1761_v39  ;;  %v1762_v41 = vadd.f32 1e-12, %v1758_v40 }
 0x881   : > { %v1755_v42 = vpop.xlane.xlu0 %1754 }
 0x882   : > { %2875 = vrsqrt.f32 %v1762_v41  ;;  %v1759_v43 = vmul.f32 0.0078125, %v1755_v42 }
 0x884   : > { %v1763_v44 = vadd.f32 1e-12, %v1759_v43 }
 0x886   : > { %2877 = vrsqrt.f32 %v1763_v44 }
 0x888   : > { %v2872_v45 = vpop.eup %2871 }
 0x889   : > { %v1768_v47 = vmul.f32 %v2872_v45, %v1740_v60  ;;  %v2828_v60 = vld [vmem:[%s3589_s25 + $0x10] sm:$0xff]  }
 0x88a   : > { %v2874_v48 = vpop.eup %2873 }
 0x88b   : > { %v1769_v2 = vmul.f32 %v2874_v48, %v1741_v6  ;;  %v1778_v49 = vmul.f32 %v2500_v46, %v1768_v47  ;;  %v2831_v6 = vld [vmem:[%s3589_s25 + $0x60] sm:$0xff]  }
 0x88c   : > { %v2876_v50 = vpop.eup %2875 }
 0x88d   : > { %v1779_v53 = vmul.f32 %v2500_v46, %v1769_v2  ;;  %v3420_v54 = vadd.f32 %v2501_v51, %v1778_v49  ;;  %v1770_v56 = vmul.f32 %v2876_v50, %v1742_v13  ;;  %v2834_v13 = vld [vmem:[%s3589_s25 + $0x28] sm:$0xff]  }
 0x88f   : > { %v3422_v55 = vadd.f32 %v2501_v51, %v1779_v53  ;;  %v1780_v62 = vmul.f32 %v2500_v46, %v1770_v56 }
 0x890   : > { %v2878_v57 = vpop.eup %2877 }
 0x891   : > { %v1809_v59 = vpack.c.bf16 %v3422_v55, %v3420_v54  ;;  %v1771_v61 = vmul.f32 %v2878_v57, %v1743_v17  ;;  %v3429_v3 = vadd.f32 %v2501_v51, %v1780_v62  ;;  %v1808_v17 = vld [vmem:[%s3197_s22] sm:$0x3] }
 0x892   : > { %v1815_v18 = vrot.slane %v1808_v17, %v3298_v20  ;;  %v1819_v19 = vrot.slane %v1808_v17, %v3301_v22 }
 0x893   : > { %1935 = vmatmul.mubr.bf16.vlgmr.msra.gmra.mrb[28].mxu0 %v1809_v59  ;;  %v1781_v63 = vmul.f32 %v2500_v46, %v1771_v61 }
 0x894   : > { %1944 = vmatprep.mubr.bf16.mxu0 %v2972_v52  ;;  %v2827_v52 = vld [vmem:[%s3589_s25 + $0x50] sm:$0xff]  }
 0x895   : > { %v3427_v0 = vadd.f32 %v2501_v51, %v1781_v63  ;;  %2582 = vmatprep.subr.bf16.mxu1 %v2827_v52 }
 0x896   : > { %2583 = vmatpush3.bf16.msra.mxu1 %v2828_v60 }
 0x897   : > { %v1810_v4 = vpack.c.bf16 %v3427_v0, %v3429_v3  ;;  %2584 = vmatprep.subr.bf16.mxu1 %v2829_v10 }
 0x89a   : > { %2585 = vmatpush3.bf16.msra.mxu1 %v2830_v11 }
 0x89b   : > { %1945 = vmatmul.mubr.bf16.gmra.mrb[32].mxu0 %v1810_v4  ;;  %2586 = vmatprep.subr.bf16.mxu1 %v2831_v6 }
 0x89e   : > { %2587 = vmatpush3.bf16.msra.mxu1 %v2832_v12 }
 0x89f   : > { %2588 = vmatprep.subr.bf16.mxu1 %v2833_v7 }
 0x8a2   : > { %2589 = vmatpush3.bf16.msra.mxu1 %v2834_v13 }
 0x8a3   : > { %2590 = vmatprep.subr.bf16.mxu1 %v2835_v14 }
 0x8a6   : > { %2591 = vmatpush3.bf16.msra.mxu1 %v2836_v15 }
 0x8a7   : > { %2592 = vmatprep.subr.bf16.mxu1 %v2837_v9 }
 0x8aa   : > { %2593 = vmatpush3.bf16.msra.mxu1 %v2838_v16 }
 0x966   : > { %v1936_v21 = vpop.f32.mrb[28].mxu0 }
 0x967   : > { %v3452_v23 = vadd.f32 %v1936_v21, %v1815_v18  ;;  %v1938_v24 = vpop.f32.mrb[29].mxu0 }
 0x968   : > { %v3454_v25 = vadd.f32 %v1938_v24, %v1819_v19  ;;  %v1940_v26 = vpop.f32.mrb[30].mxu0 }
 0x969   : > { %v1963_v27 = vmul.f32 0.044715, %v3452_v23  ;;  %v3457_v28 = vadd.f32 %v1940_v26, %v1815_v18  ;;  %v1942_v29 = vpop.f32.mrb[31].mxu0  ;;  %v1955_v26 = vmul.f32 0.5, %v3452_v23 }
 0x96a   : > { %v1964_v30 = vmul.f32 0.044715, %v3454_v25  ;;  %v3460_v31 = vadd.f32 %v1942_v29, %v1819_v19 }
 0x96b   : > { %v1971_v20 = vmul.f32 %v1963_v27, %v3452_v23  ;;  %v1965_v22 = vmul.f32 0.044715, %v3457_v28  ;;  %v1957_v27 = vmul.f32 0.5, %v3457_v28 }
 0x96c   : > { %v1972_v32 = vmul.f32 %v1964_v30, %v3454_v25  ;;  %v1966_v33 = vmul.f32 0.044715, %v3460_v31  ;;  %v1956_v30 = vmul.f32 0.5, %v3454_v25 }
 0x96d   : > { %v1979_v34 = vmul.f32 %v1971_v20, %v3452_v23  ;;  %v1973_v35 = vmul.f32 %v1965_v22, %v3457_v28  ;;  %v1958_v20 = vmul.f32 0.5, %v3460_v31 }
 0x96e   : > { %v1980_v36 = vmul.f32 %v1972_v32, %v3454_v25  ;;  %v1974_v37 = vmul.f32 %v1966_v33, %v3460_v31  ;;  %v1946_v38 = vpop.f32.mrb[32].mxu0 }
 0x96f   : > { %v1987_v39 = vadd.f32 %v1979_v34, %v3452_v23  ;;  %v1981_v40 = vmul.f32 %v1973_v35, %v3457_v28  ;;  %v3472_v41 = vadd.f32 %v1946_v38, %v1815_v18  ;;  %v1948_v42 = vpop.f32.mrb[33].mxu0 }
 0x970   : > { %v1982_v43 = vmul.f32 %v1974_v37, %v3460_v31  ;;  %v3475_v44 = vadd.f32 %v1948_v42, %v1819_v19  ;;  %v1950_v45 = vpop.f32.mrb[34].mxu0  ;;  %v1988_v46 = vadd.f32 %v1980_v36, %v3454_v25 }
 0x971   : > { %v1995_v47 = vmul.f32 0.7978846, %v1987_v39  ;;  %v1989_v48 = vadd.f32 %v1981_v40, %v3457_v28  ;;  %v1967_v2 = vmul.f32 0.044715, %v3472_v41  ;;  %v1951_v49 = vadd.f32 %v1950_v45, %v1815_v18  ;;  %v1952_v50 = vpop.f32.mrb[35].mxu0 }
 0x972   : > { %v1968_v51 = vmul.f32 0.044715, %v3475_v44  ;;  %v1953_v53 = vadd.f32 %v1952_v50, %v1819_v19  ;;  %v1990_v56 = vadd.f32 %v1982_v43, %v3460_v31  ;;  %v1996_v57 = vmul.f32 0.7978846, %v1988_v46 }
 0x973   : > { %2879 = vtanh.f32 %v1995_v47  ;;  %v1997_v59 = vmul.f32 0.7978846, %v1989_v48  ;;  %v1975_v61 = vmul.f32 %v1967_v2, %v3472_v41  ;;  %v1969_v62 = vmul.f32 0.044715, %v1951_v49 }
 0x974   : > { %v1976_v63 = vmul.f32 %v1968_v51, %v3475_v44  ;;  %v1970_v4 = vmul.f32 0.044715, %v1953_v53  ;;  %v1998_v1 = vmul.f32 0.7978846, %v1990_v56  ;;  %2881 = vtanh.f32 %v1996_v57 }
 0x975   : > { %2883 = vtanh.f32 %v1997_v59  ;;  %v1983_v58 = vmul.f32 %v1975_v61, %v3472_v41  ;;  %v1977_v5 = vmul.f32 %v1969_v62, %v1951_v49  ;;  %v1959_v25 = vmul.f32 0.5, %v3472_v41 }
 0x976   : > { %v1984_v8 = vmul.f32 %v1976_v63, %v3475_v44  ;;  %v1978_v52 = vmul.f32 %v1970_v4, %v1953_v53  ;;  %2885 = vtanh.f32 %v1998_v1  ;;  %v1961_v28 = vmul.f32 0.5, %v1951_v49 }
 0x977   : > { %v1985_v60 = vmul.f32 %v1977_v5, %v1951_v49  ;;  %v1991_v10 = vadd.f32 %v1983_v58, %v3472_v41  ;;  %v1960_v45 = vmul.f32 0.5, %v3475_v44  ;;  %v1962_v46 = vmul.f32 0.5, %v1953_v53  ;;  %v2518_v41 = vld [vmem:[%s698_s3] ss:$0 sm:$0xff] }
 0x978   : > { %v1986_v11 = vmul.f32 %v1978_v52, %v1953_v53  ;;  %v1992_v6 = vadd.f32 %v1984_v8, %v3475_v44 }
 0x979   : > { %v1993_v12 = vadd.f32 %v1985_v60, %v1951_v49  ;;  %v1999_v7 = vmul.f32 0.7978846, %v1991_v10 }
 0x97a   : > { %v1994_v13 = vadd.f32 %v1986_v11, %v1953_v53  ;;  %v2000_v14 = vmul.f32 0.7978846, %v1992_v6 }
 0x97b   : > { %v2001_v15 = vmul.f32 0.7978846, %v1993_v12  ;;  %2887 = vtanh.f32 %v1999_v7 }
 0x97c   : > { %v2002_v9 = vmul.f32 0.7978846, %v1994_v13  ;;  %2889 = vtanh.f32 %v2000_v14 }
 0x97d   : > { %v2880_v16 = vpop.eup %2879  ;;  %2891 = vtanh.f32 %v2001_v15 }
 0x97e   : > { %v2882_v17 = vpop.eup %2881  ;;  %v2011_v18 = vadd.f32 1.0, %v2880_v16  ;;  %2893 = vtanh.f32 %v2002_v9 }
 0x97f   : > { %v2884_v19 = vpop.eup %2883  ;;  %v2012_v21 = vadd.f32 1.0, %v2882_v17 }
 0x980   : > { %v2886_v24 = vpop.eup %2885  ;;  %v2013_v29 = vadd.f32 1.0, %v2884_v19  ;;  %v2019_v32 = vmul.f32 %v2011_v18, %v1955_v26 }
 0x981   : > { %v2014_v22 = vadd.f32 1.0, %v2886_v24  ;;  %v2020_v34 = vmul.f32 %v2012_v21, %v1956_v30 }
 0x982   : > { %v2021_v33 = vmul.f32 %v2013_v29, %v1957_v27 }
 0x983   : > { %v2022_v35 = vmul.f32 %v2014_v22, %v1958_v20 }
 0x984   : > { %v2060_v36 = vpack.c.bf16 %v2021_v33, %v2019_v32 }
 0x985   : > { %v2888_v37 = vpop.eup %2887  ;;  %v2061_v38 = vpack.c.bf16 %v2022_v35, %v2020_v34 }
 0x986   : > { %v2890_v39 = vpop.eup %2889  ;;  %v2015_v40 = vadd.f32 1.0, %v2888_v37 }
 0x987   : > { %v2892_v42 = vpop.eup %2891  ;;  %2198 = vmatprep.mubr.bf16.mxu1 %v2061_v38  ;;  %v2016_v23 = vadd.f32 1.0, %v2890_v39 }
 0x988   : > { %v2894_v43 = vpop.eup %2893  ;;  %2199 = vmatmul.mubr.bf16.vlgmr.msra.gmra.mrb[20].mxu1 %v2060_v36  ;;  %v2017_v31 = vadd.f32 1.0, %v2892_v42  ;;  %v2023_v48 = vmul.f32 %v2015_v40, %v1959_v25 }
 0x989   : > { %v2018_v47 = vadd.f32 1.0, %v2894_v43  ;;  %v2024_v50 = vmul.f32 %v2016_v23, %v1960_v45  ;;  %v2535_v23 = vld [vmem:[%s701_s29] ss:$0 sm:$0xff] }
 0x98a   : > { %v2025_v2 = vmul.f32 %v2017_v31, %v1961_v28  ;;  %v2536_v28 = vld [vmem:[%s704_s24] ss:$0 sm:$0xff] }
 0x98b   : > { %v2026_v51 = vmul.f32 %v2018_v47, %v1962_v46 }
 0x98c   : > { %v2062_v56 = vpack.c.bf16 %v2025_v2, %v2023_v48 }
 0x98d   : > { %v2063_v57 = vpack.c.bf16 %v2026_v51, %v2024_v50 }
 0x98f   : > { %2206 = vmatprep.mubr.bf16.mxu1 %v2063_v57 }
 0x990   : > { %2207 = vmatmul.mubr.bf16.gmra.mrb[24].mxu1 %v2062_v56 }
 0xa5b   : > { %v2594_v59 = vpop.f32.mrb[20].mxu1 }
 0xa5c   : > { %v2595_v49 = vpop.f32.mrb[21].mxu1 }
 0xa5d   : > { %v2596_v61 = vadd.f32 %v2595_v49, %v2594_v59  ;;  %v2597_v62 = vpop.f32.mrb[22].mxu1 }
 0xa5e   : > { %v2598_v44 = vpop.f32.mrb[23].mxu1 }
 0xa5f   : > { %v2201_v53 = vadd.f32 %v2596_v61, %v2518_v41  ;;  %v2599_v63 = vadd.f32 %v2598_v44, %v2597_v62 }
 0xa61   : > { %v2204_v4 = vadd.f32 %v2599_v63, %v2518_v41  ;;  %v2215_v1 = vadd.f32 %v2201_v53, %v3420_v54 }
 0xa63   : > { %v2600_v58 = vpop.f32.mrb[24].mxu1  ;;  %2221 = vadd.xlane.f32.xlu1 %v2215_v1  ;;  %v2216_v5 = vadd.f32 %v2204_v4, %v3422_v55 }
 0xa64   : > { %v2601_v8 = vpop.f32.mrb[25].mxu1 }
 0xa65   : > { %v2602_v52 = vadd.f32 %v2601_v8, %v2600_v58  ;;  %v2603_v60 = vpop.f32.mrb[26].mxu1  ;;  %2223 = vadd.xlane.f32.xlu0 %v2216_v5 }
 0xa66   : > { %v2604_v10 = vpop.f32.mrb[27].mxu1 }
 0xa67   : > { %v2209_v11 = vadd.f32 %v2602_v52, %v2518_v41  ;;  %v2605_v6 = vadd.f32 %v2604_v10, %v2603_v60 }
 0xa69   : > { %v2212_v12 = vadd.f32 %v2605_v6, %v2518_v41  ;;  %v2217_v7 = vadd.f32 %v2209_v11, %v3429_v3 }
 0xa6b   : > { %2225 = vadd.xlane.f32.xlu1 %v2217_v7  ;;  %v2218_v13 = vadd.f32 %v2212_v12, %v3427_v0 }
 0xa6d   : > { %2227 = vadd.xlane.f32.xlu0 %v2218_v13 }
 0xaf0   : > { %v2222_v14 = vpop.xlane.xlu1 %2221 }
 0xaf1   : > { %v2229_v54 = vmul.f32 0.0078125, %v2222_v14 }
 0xaf2   : > { %v2224_v15 = vpop.xlane.xlu0 %2223 }
 0xaf3   : > { %v2233_v9 = vsub.f32 %v2215_v1, %v2229_v54  ;;  %v2230_v16 = vmul.f32 0.0078125, %v2224_v15 }
 0xaf5   : > { %v2234_v55 = vsub.f32 %v2216_v5, %v2230_v16  ;;  %v2237_v17 = vmul.f32 %v2233_v9, %v2233_v9 }
 0xaf7   : > { %2241 = vadd.xlane.f32.xlu1 %v2237_v17  ;;  %v2238_v18 = vmul.f32 %v2234_v55, %v2234_v55 }
 0xaf8   : > { %v2226_v19 = vpop.xlane.xlu1 %2225 }
 0xaf9   : > { %v2231_v21 = vmul.f32 0.0078125, %v2226_v19  ;;  %2243 = vadd.xlane.f32.xlu0 %v2238_v18 }
 0xafa   : > { %v2228_v24 = vpop.xlane.xlu0 %2227 }
 0xafb   : > { %v2235_v26 = vsub.f32 %v2217_v7, %v2231_v21  ;;  %v2232_v27 = vmul.f32 0.0078125, %v2228_v24 }
 0xafd   : > { %v2236_v3 = vsub.f32 %v2218_v13, %v2232_v27  ;;  %v2239_v29 = vmul.f32 %v2235_v26, %v2235_v26 }
 0xaff   : > { %2245 = vadd.xlane.f32.xlu1 %v2239_v29  ;;  %v2240_v0 = vmul.f32 %v2236_v3, %v2236_v3 }
 0xb01   : > { %2247 = vadd.xlane.f32.xlu0 %v2240_v0 }
 0xb84   : > { %v2242_v30 = vpop.xlane.xlu1 %2241 }
 0xb85   : > { %v2249_v20 = vmul.f32 0.0078125, %v2242_v30 }
 0xb86   : > { %v2244_v22 = vpop.xlane.xlu0 %2243 }
 0xb87   : > { %v2253_v32 = vadd.f32 1e-12, %v2249_v20  ;;  %v2250_v33 = vmul.f32 0.0078125, %v2244_v22 }
 0xb89   : > { %2895 = vrsqrt.f32 %v2253_v32  ;;  %v2254_v34 = vadd.f32 1e-12, %v2250_v33 }
 0xb8b   : > { %2897 = vrsqrt.f32 %v2254_v34 }
 0xb8c   : > { %v2246_v35 = vpop.xlane.xlu1 %2245 }
 0xb8d   : > { %v2251_v36 = vmul.f32 0.0078125, %v2246_v35 }
 0xb8e   : > { %v2248_v37 = vpop.xlane.xlu0 %2247 }
 0xb8f   : > { %v2255_v38 = vadd.f32 1e-12, %v2251_v36  ;;  %v2252_v39 = vmul.f32 0.0078125, %v2248_v37 }
 0xb91   : > { %2899 = vrsqrt.f32 %v2255_v38  ;;  %v2256_v40 = vadd.f32 1e-12, %v2252_v39 }
 0xb93   : > { %v2896_v42 = vpop.eup %2895  ;;  %2901 = vrsqrt.f32 %v2256_v40 }
 0xb94   : > { %v2261_v43 = vmul.f32 %v2896_v42, %v2233_v9 }
 0xb95   : > { %v2898_v25 = vpop.eup %2897 }
 0xb96   : > { %v2271_v31 = vmul.f32 %v2535_v23, %v2261_v43  ;;  %v2262_v45 = vmul.f32 %v2898_v25, %v2234_v55 }
 0xb98   : > { %v2281_v46 = vadd.f32 %v2536_v28, %v2271_v31  ;;  %v2272_v47 = vmul.f32 %v2535_v23, %v2262_v45 }
 0xb9a   : > { %2285 = vst [vmem:[%s3584_s0] sm:$0xff] %v2281_v46  ;;  %v2282_v48 = vadd.f32 %v2536_v28, %v2272_v47 }
 0xb9b   : > { %v2900_v2 = vpop.eup %2899 }
 0xb9c   : > { %2286 = vst [vmem:[%s3584_s0 + $0x8] sm:$0xff] %v2282_v48  ;;  %v2263_v50 = vmul.f32 %v2900_v2, %v2235_v26 }
 0xb9d   : > { %v2902_v51 = vpop.eup %2901 }
 0xb9e   : > { %v2273_v56 = vmul.f32 %v2535_v23, %v2263_v50  ;;  %v2264_v57 = vmul.f32 %v2902_v51, %v2236_v3 }
 0xba0   : > { %v2283_v59 = vadd.f32 %v2536_v28, %v2273_v56  ;;  %v2274_v41 = vmul.f32 %v2535_v23, %v2264_v57 }
 0xba2   : > { %2287 = vst [vmem:[%s3584_s0 + $0x10] sm:$0xff] %v2283_v59  ;;  %v2284_v49 = vadd.f32 %v2536_v28, %v2274_v41 }
 0xba4   : > { %2288 = vst [vmem:[%s3584_s0 + $0x18] sm:$0xff] %v2284_v49 }
 0xba5 PF: > { %s3590_s24 = sld [smem:[#allocation7_spill]]  ;;  %s3591_s21 = sld [smem:[#allocation5_spill]] }
 0xba6   : > { %s3592_s22 = sld [smem:[#allocation6_spill]]  ;;  %s3593_s23 = sld [smem:[#allocation8_spill]] }
 0xbab   : > { %p26_p8 = scmp.ge.s32.totalorder %s3590_s24, 4  }
 0xbad   :  { %28 = sbr.rel (!%p26_p8) target bundleno = 11 (0xb), region = 157 }
 0xbb4   :  { %2300 = vsyncpa [#allocation3], 1 }
 0xbb5   :  { %2302 = vsyncpa [#allocation3 + $0x1], 1 }

</bundles_post_ra>
